<compile_context>
chip_gen: v7x
topology: tpu7x:2x2x1
jax: 0.10.0
libtpu: 0.0.40
codegen_flags: <defaults>
</compile_context>

<pallas_src>
import jax
import jax.numpy as jnp
from jax.experimental import pallas as pl
from jax.experimental.pallas import tpu as pltpu

# ---- small, module-consistent dims (knob_dim, input_dim, hidden_dim, output_dim, batch)
KNOB = 32
IN_DIM = 64
HID = 32
OUT_DIM = 16          # latent_dim is undefined in the original module; treated as output_dim
B = 8

TK = 8                # knobs processed per gen-kernel grid step
assert KNOB % TK == 0

LAYER_DIMS = [
    (IN_DIM, 2 * HID),   # down_mlp_1
    (2 * HID, HID),      # down_mlp_2
    (HID, 2 * HID),      # up_mlp_2
    (2 * HID, OUT_DIM),  # up_mlp_1  (latent_dim == output_dim)
]

_INV_SQRT2 = 0.7071067811865476


def _erf(x):
    # TODO(synk): lax.erf has no guaranteed Mosaic lowering; Abramowitz & Stegun
    # 7.1.26 rational approximation (max abs err ~1.5e-7) matches torch's exact
    # erf GELU at f32 tolerance.  Per review: do NOT use pl.reciprocal(approx=True)
    # for the 1/(1+p*ax) term (t is raised to the 5th power).
    a1, a2, a3, a4, a5 = 0.254829592, -0.284496736, 1.421413741, -1.453152027, 1.061405429
    p = 0.3275911
    s = jnp.sign(x)
    ax = jnp.abs(x)
    t = 1.0 / (1.0 + p * ax)
    poly = ((((a5 * t + a4) * t + a3) * t + a2) * t + a1) * t
    return s * (1.0 - poly * jnp.exp(-ax * ax))


def _gelu_exact(x):
    # F.gelu default (approximate='none'): 0.5 * x * (1 + erf(x / sqrt(2)))
    return 0.5 * x * (1.0 + _erf(x * _INV_SQRT2))


# =====================================================================================
# Kernel 1: weight generation.  Grid over the knob axis -> generator DMA is
# pipelined against the FMA accumulation; outputs stay VMEM-resident across steps.
# =====================================================================================

def gen_kernel(k_ref,                       # (KNOB,) f32 in SMEM
               g1, g2, g3, g4,              # (TK, in+1, out) generator blocks
               c1, c2, c3, c4,              # (in+1, out)     constant parts
               o1, o2, o3, o4):             # (in+1, out)     generated weights (W | b-row)
    kb = pl.program_id(0)
    base = kb * TK
    # Only this step's TK knob scalars are read (review: no 32-scalar hoist).
    ks = [k_ref[base + j] for j in range(TK)]

    def accum(g_ref, c_ref, o_ref):
        @pl.when(kb == 0)
        def _init():
            o_ref[...] = c_ref[...]
        # 2 partial accumulators -> dependence chain of TK/2 per step (review item).
        a0 = ks[0] * g_ref[0]
        a1 = ks[1] * g_ref[1]
        for j in range(2, TK, 2):
            a0 = a0 + ks[j] * g_ref[j]
            a1 = a1 + ks[j + 1] * g_ref[j + 1]
        o_ref[...] += a0 + a1

    accum(g1, c1, o1)
    accum(g2, c2, o2)
    accum(g3, c3, o3)
    accum(g4, c4, o4)


@jax.jit
def generate_weights(notion, prepared):
    """Run once per notion k; output (~37 KiB) should be cached by the caller."""
    k = notion.reshape(-1).astype(jnp.float32)          # k = k.view(-1)
    g_slabs = prepared[:4]
    c_slabs = prepared[4:]

    smem = pl.BlockSpec(memory_space=pltpu.MemorySpace.SMEM)
    g_specs = [pl.BlockSpec((TK, g.shape[1], g.shape[2]), lambda kb: (kb, 0, 0))
               for g in g_slabs]
    c_specs = [pl.BlockSpec(c.shape, lambda kb: (0, 0)) for c in c_slabs]
    out_specs = [pl.BlockSpec(c.shape, lambda kb: (0, 0)) for c in c_slabs]
    out_shape = tuple(jax.ShapeDtypeStruct(c.shape, jnp.float32) for c in c_slabs)

    return pl.pallas_call(
        gen_kernel,
        grid=(KNOB // TK,),
        in_specs=[smem] + g_specs + c_specs,
        out_specs=out_specs,
        out_shape=out_shape,
        compiler_params=pltpu.CompilerParams(
            dimension_semantics=("arbitrary",)),   # knob axis = reduction into resident outputs
    )(k, *g_slabs, *c_slabs)


# =====================================================================================
# Kernel 2: the hot-path encoder.  4 MXU matmuls + GELU + residual; reads only the
# tiny generated (in+1, out) weight slabs (last row = bias).
# =====================================================================================

def encode_kernel(x_ref, w1_ref, w2_ref, w3_ref, w4_ref, o_ref):
    def layer(h, w_ref, in_d):
        w = w_ref[0:in_d, :]                  # (in, out)
        b = w_ref[in_d:in_d + 1, :]           # (1, out)  -- folded bias row
        y = jnp.dot(h, w, preferred_element_type=jnp.float32) + b
        return _gelu_exact(y)

    x = x_ref[...]
    h1 = layer(x, w1_ref, IN_DIM)
    h2 = layer(h1, w2_ref, 2 * HID)
    h3 = layer(h2, w3_ref, HID) + h1
    o_ref[...] = layer(h3, w4_ref, 2 * HID)


@jax.jit
def encode(x, weights):
    x = x.astype(jnp.float32)
    b_sz = x.shape[0]
    tb = min(b_sz, 128)                       # batch tile; grid shards across v7x's 2 TCs
    in_specs = [pl.BlockSpec((tb, IN_DIM), lambda b: (b, 0))]
    for w in weights:
        in_specs.append(pl.BlockSpec(w.shape, lambda b: (0, 0)))   # weights resident
    return pl.pallas_call(
        encode_kernel,
        grid=(pl.cdiv(b_sz, tb),),
        in_specs=in_specs,
        out_specs=pl.BlockSpec((tb, OUT_DIM), lambda b: (b, 0)),
        out_shape=jax.ShapeDtypeStruct((b_sz, OUT_DIM), jnp.float32),
        compiler_params=pltpu.CompilerParams(
            dimension_semantics=("parallel",)),
    )(x, *weights)


@jax.jit
def hyper_encoder_forward(notion, x, prepared):
    """k-changes-every-call path: generate then encode (two clean pallas_calls)."""
    return encode(x, generate_weights(notion, prepared))


# =====================================================================================
# Parameter-only preprocessing (hoisted, done once, outside the forward path).
# =====================================================================================

def prepare_hyper_params(params):
    """Pre-permute hypernet params; fold the bias generator in as an extra row.

    Per layer:
      Ghat (KNOB, in+1, out):  Ghat[j, :in, :] = W-generator for knob j (so that the
                               generated W is already (in, out) row-major for x @ W),
                               Ghat[j,  in, :] = bias generator row.
      Chat (in+1, out):        constant part (ff_b reshaped | b_b row).
    """
    g_list, c_list = [], []
    for (ff_w, ff_b, b_w, b_b), (in_d, out_d) in zip(params, LAYER_DIMS):
        # torch: W_eff[i,o] = (ff_w @ k + ff_b)[o*in + i]   (then x @ W_eff)
        wg = jnp.transpose(ff_w.reshape(out_d, in_d, KNOB), (2, 1, 0))   # (KNOB, in, out)
        wc = ff_b.reshape(out_d, in_d).T                                  # (in, out)
        bg = b_w.T[:, None, :]                                            # (KNOB, 1, out)
        bc = b_b[None, :]                                                 # (1, out)
        ghat = jnp.concatenate([wg, bg], axis=1).astype(jnp.float32)      # (KNOB, in+1, out)
        chat = jnp.concatenate([wc, bc], axis=0).astype(jnp.float32)      # (in+1, out)
        g_list.append(ghat)
        c_list.append(chat)
    return tuple(g_list) + tuple(c_list)


# =====================================================================================
# Deterministic params + pure-JAX reference.
# =====================================================================================

def init_hypermlp(key, knob, in_d, out_d):
    k1, k2, k3, k4 = jax.random.split(key, 4)
    s = 1.0 / jnp.sqrt(jnp.float32(knob))
    ff_w = jax.random.normal(k1, (in_d * out_d, knob), jnp.float32) * s    # nn.Linear(knob, in*out).weight
    ff_b = jax.random.normal(k2, (in_d * out_d,), jnp.float32) * 0.1       # its bias
    b_w = jax.random.normal(k3, (out_d, knob), jnp.float32) * s            # nn.Linear(knob, out).weight
    b_b = jax.random.normal(k4, (out_d,), jnp.float32) * 0.1               # its bias
    return (ff_w, ff_b, b_w, b_b)


def reference_forward(notion, x, params):
    k = notion.reshape(-1)
    hi = jax.lax.Precision.HIGHEST

    def hypermlp(p, in_d, out_d, xin):
        ff_w, ff_b, b_w, b_b = p
        w = (jnp.dot(ff_w, k, precision=hi) + ff_b).reshape(out_d, in_d)
        b = jnp.dot(b_w, k, precision=hi) + b_b
        return jnp.dot(xin, w.T, precision=hi) + b

    g = lambda v: jax.nn.gelu(v, approximate=False)
    h1 = g(hypermlp(params[0], *LAYER_DIMS[0], x))
    h2 = g(hypermlp(params[1], *LAYER_DIMS[1], h1))
    h3 = g(hypermlp(params[2], *LAYER_DIMS[2], h2)) + h1
    h4 = g(hypermlp(params[3], *LAYER_DIMS[3], h3))
    return h4


if __name__ == "__main__":
    root = jax.random.PRNGKey(0)
    k_params, k_notion, k_x = jax.random.split(root, 3)
    layer_keys = jax.random.split(k_params, len(LAYER_DIMS))
    params = [init_hypermlp(lk, KNOB, in_d, out_d)
              for lk, (in_d, out_d) in zip(layer_keys, LAYER_DIMS)]

    prepared = prepare_hyper_params(params)            # hoisted, parameter-only

    notion = jax.random.normal(k_notion, (1, KNOB), jnp.float32)
    x = jax.random.normal(k_x, (B, IN_DIM), jnp.float32)

    # Cached-weights path (notion reused across calls): generate once, encode many.
    weights = jax.block_until_ready(generate_weights(notion, prepared))
    out_cached = jax.block_until_ready(encode(x, weights))

    # Fused forward (notion changes every call): same two kernels composed.
    out = jax.block_until_ready(hyper_encoder_forward(notion, x, prepared))

    ref = reference_forward(notion, x, params)
    assert out.shape == (B, OUT_DIM)
    assert jnp.allclose(out, out_cached), "cached-weights path disagrees with fused forward"
    assert jnp.allclose(out, ref, atol=1e-4, rtol=1e-4), (
        f"max abs diff {jnp.max(jnp.abs(out - ref))}")

    print("KERNEL_OK")
</pallas_src>

<mosaic_0001>
module attributes {stable_mosaic.version = 11 : i64} {
  func.func @gen_kernel(%arg0: i32, %arg1: memref<32xf32, #tpu.memory_space<smem>>, %arg2: memref<8x65x64xf32, #tpu.memory_space<vmem>>, %arg3: memref<8x65x32xf32, #tpu.memory_space<vmem>>, %arg4: memref<8x33x64xf32, #tpu.memory_space<vmem>>, %arg5: memref<8x65x16xf32, #tpu.memory_space<vmem>>, %arg6: memref<65x64xf32, #tpu.memory_space<vmem>>, %arg7: memref<65x32xf32, #tpu.memory_space<vmem>>, %arg8: memref<33x64xf32, #tpu.memory_space<vmem>>, %arg9: memref<65x16xf32, #tpu.memory_space<vmem>>, %arg10: memref<65x64xf32, #tpu.memory_space<vmem>>, %arg11: memref<65x32xf32, #tpu.memory_space<vmem>>, %arg12: memref<33x64xf32, #tpu.memory_space<vmem>>, %arg13: memref<65x16xf32, #tpu.memory_space<vmem>>) attributes {dimension_semantics = [#tpu.dimension_semantics<arbitrary>], iteration_bounds = array<i64: 4>, scalar_prefetch = 0 : i64, scratch_operands = 0 : i64, tpu.core_type = #tpu.core_type<tc>, window_params = [{transform_indices = @transform_0, window_bounds = array<i64: 32>}, {transform_indices = @transform_1, window_bounds = array<i64: 8, 65, 64>}, {transform_indices = @transform_2, window_bounds = array<i64: 8, 65, 32>}, {transform_indices = @transform_3, window_bounds = array<i64: 8, 33, 64>}, {transform_indices = @transform_4, window_bounds = array<i64: 8, 65, 16>}, {pipeline_mode = #tpu.pipeline_mode<synchronous>, transform_indices = @transform_5, window_bounds = array<i64: 65, 64>}, {pipeline_mode = #tpu.pipeline_mode<synchronous>, transform_indices = @transform_6, window_bounds = array<i64: 65, 32>}, {pipeline_mode = #tpu.pipeline_mode<synchronous>, transform_indices = @transform_7, window_bounds = array<i64: 33, 64>}, {pipeline_mode = #tpu.pipeline_mode<synchronous>, transform_indices = @transform_8, window_bounds = array<i64: 65, 16>}, {pipeline_mode = #tpu.pipeline_mode<synchronous>, transform_indices = @transform_9, window_bounds = array<i64: 65, 64>}, {pipeline_mode = #tpu.pipeline_mode<synchronous>, transform_indices = @transform_10, window_bounds = array<i64: 65, 32>}, {pipeline_mode = #tpu.pipeline_mode<synchronous>, transform_indices = @transform_11, window_bounds = array<i64: 33, 64>}, {pipeline_mode = #tpu.pipeline_mode<synchronous>, transform_indices = @transform_12, window_bounds = array<i64: 65, 16>}]} {
    %c8_i32 = arith.constant 8 : i32
    %0 = arith.muli %arg0, %c8_i32 : i32
    %c0_i32 = arith.constant 0 : i32
    %1 = arith.addi %0, %c0_i32 : i32
    %2 = arith.index_cast %1 : i32 to index
    %3 = memref.load %arg1[%2] : memref<32xf32, #tpu.memory_space<smem>>
    %c1_i32 = arith.constant 1 : i32
    %4 = arith.addi %0, %c1_i32 : i32
    %5 = arith.index_cast %4 : i32 to index
    %6 = memref.load %arg1[%5] : memref<32xf32, #tpu.memory_space<smem>>
    %c2_i32 = arith.constant 2 : i32
    %7 = arith.addi %0, %c2_i32 : i32
    %8 = arith.index_cast %7 : i32 to index
    %9 = memref.load %arg1[%8] : memref<32xf32, #tpu.memory_space<smem>>
    %c3_i32 = arith.constant 3 : i32
    %10 = arith.addi %0, %c3_i32 : i32
    %11 = arith.index_cast %10 : i32 to index
    %12 = memref.load %arg1[%11] : memref<32xf32, #tpu.memory_space<smem>>
    %c4_i32 = arith.constant 4 : i32
    %13 = arith.addi %0, %c4_i32 : i32
    %14 = arith.index_cast %13 : i32 to index
    %15 = memref.load %arg1[%14] : memref<32xf32, #tpu.memory_space<smem>>
    %c5_i32 = arith.constant 5 : i32
    %16 = arith.addi %0, %c5_i32 : i32
    %17 = arith.index_cast %16 : i32 to index
    %18 = memref.load %arg1[%17] : memref<32xf32, #tpu.memory_space<smem>>
    %c6_i32 = arith.constant 6 : i32
    %19 = arith.addi %0, %c6_i32 : i32
    %20 = arith.index_cast %19 : i32 to index
    %21 = memref.load %arg1[%20] : memref<32xf32, #tpu.memory_space<smem>>
    %c7_i32 = arith.constant 7 : i32
    %22 = arith.addi %0, %c7_i32 : i32
    %23 = arith.index_cast %22 : i32 to index
    %24 = memref.load %arg1[%23] : memref<32xf32, #tpu.memory_space<smem>>
    %c0_i32_0 = arith.constant 0 : i32
    %25 = arith.cmpi eq, %arg0, %c0_i32_0 : i32
    %26 = arith.extui %25 : i1 to i32
    %c0_i32_1 = arith.constant 0 : i32
    %27 = arith.cmpi ne, %26, %c0_i32_1 : i32
    scf.if %27 {
      %c0_112 = arith.constant 0 : index
      %c0_113 = arith.constant 0 : index
      %205 = vector.load %arg6[%c0_112, %c0_113] : memref<65x64xf32, #tpu.memory_space<vmem>>, vector<65x64xf32>
      %c0_114 = arith.constant 0 : index
      %c0_115 = arith.constant 0 : index
      %206 = vector.load %arg10[%c0_114, %c0_115] : memref<65x64xf32, #tpu.memory_space<vmem>>, vector<65x64xf32>
      tpu.vector_store %arg10[%c0_114, %c0_115], %205 {strides = array<i32>} : memref<65x64xf32, #tpu.memory_space<vmem>>, vector<65x64xf32>,
    } else {
    }
    %c0 = arith.constant 0 : index
    %c0_2 = arith.constant 0 : index
    %c0_3 = arith.constant 0 : index
    %28 = vector.load %arg2[%c0, %c0_2, %c0_3] : memref<8x65x64xf32, #tpu.memory_space<vmem>>, vector<1x65x64xf32>
    %29 = vector.shape_cast %28 : vector<1x65x64xf32> to vector<65x64xf32>
    %30 = vector.broadcast %3 : f32 to vector<65x64xf32>
    %31 = arith.mulf %30, %29 : vector<65x64xf32>
    %c1 = arith.constant 1 : index
    %c0_4 = arith.constant 0 : index
    %c0_5 = arith.constant 0 : index
    %32 = vector.load %arg2[%c1, %c0_4, %c0_5] : memref<8x65x64xf32, #tpu.memory_space<vmem>>, vector<1x65x64xf32>
    %33 = vector.shape_cast %32 : vector<1x65x64xf32> to vector<65x64xf32>
    %34 = vector.broadcast %6 : f32 to vector<65x64xf32>
    %35 = arith.mulf %34, %33 : vector<65x64xf32>
    %c2 = arith.constant 2 : index
    %c0_6 = arith.constant 0 : index
    %c0_7 = arith.constant 0 : index
    %36 = vector.load %arg2[%c2, %c0_6, %c0_7] : memref<8x65x64xf32, #tpu.memory_space<vmem>>, vector<1x65x64xf32>
    %37 = vector.shape_cast %36 : vector<1x65x64xf32> to vector<65x64xf32>
    %38 = vector.broadcast %9 : f32 to vector<65x64xf32>
    %39 = arith.mulf %38, %37 : vector<65x64xf32>
    %40 = arith.addf %31, %39 : vector<65x64xf32>
    %c3 = arith.constant 3 : index
    %c0_8 = arith.constant 0 : index
    %c0_9 = arith.constant 0 : index
    %41 = vector.load %arg2[%c3, %c0_8, %c0_9] : memref<8x65x64xf32, #tpu.memory_space<vmem>>, vector<1x65x64xf32>
    %42 = vector.shape_cast %41 : vector<1x65x64xf32> to vector<65x64xf32>
    %43 = vector.broadcast %12 : f32 to vector<65x64xf32>
    %44 = arith.mulf %43, %42 : vector<65x64xf32>
    %45 = arith.addf %35, %44 : vector<65x64xf32>
    %c4 = arith.constant 4 : index
    %c0_10 = arith.constant 0 : index
    %c0_11 = arith.constant 0 : index
    %46 = vector.load %arg2[%c4, %c0_10, %c0_11] : memref<8x65x64xf32, #tpu.memory_space<vmem>>, vector<1x65x64xf32>
    %47 = vector.shape_cast %46 : vector<1x65x64xf32> to vector<65x64xf32>
    %48 = vector.broadcast %15 : f32 to vector<65x64xf32>
    %49 = arith.mulf %48, %47 : vector<65x64xf32>
    %50 = arith.addf %40, %49 : vector<65x64xf32>
    %c5 = arith.constant 5 : index
    %c0_12 = arith.constant 0 : index
    %c0_13 = arith.constant 0 : index
    %51 = vector.load %arg2[%c5, %c0_12, %c0_13] : memref<8x65x64xf32, #tpu.memory_space<vmem>>, vector<1x65x64xf32>
    %52 = vector.shape_cast %51 : vector<1x65x64xf32> to vector<65x64xf32>
    %53 = vector.broadcast %18 : f32 to vector<65x64xf32>
    %54 = arith.mulf %53, %52 : vector<65x64xf32>
    %55 = arith.addf %45, %54 : vector<65x64xf32>
    %c6 = arith.constant 6 : index
    %c0_14 = arith.constant 0 : index
    %c0_15 = arith.constant 0 : index
    %56 = vector.load %arg2[%c6, %c0_14, %c0_15] : memref<8x65x64xf32, #tpu.memory_space<vmem>>, vector<1x65x64xf32>
    %57 = vector.shape_cast %56 : vector<1x65x64xf32> to vector<65x64xf32>
    %58 = vector.broadcast %21 : f32 to vector<65x64xf32>
    %59 = arith.mulf %58, %57 : vector<65x64xf32>
    %60 = arith.addf %50, %59 : vector<65x64xf32>
    %c7 = arith.constant 7 : index
    %c0_16 = arith.constant 0 : index
    %c0_17 = arith.constant 0 : index
    %61 = vector.load %arg2[%c7, %c0_16, %c0_17] : memref<8x65x64xf32, #tpu.memory_space<vmem>>, vector<1x65x64xf32>
    %62 = vector.shape_cast %61 : vector<1x65x64xf32> to vector<65x64xf32>
    %63 = vector.broadcast %24 : f32 to vector<65x64xf32>
    %64 = arith.mulf %63, %62 : vector<65x64xf32>
    %65 = arith.addf %55, %64 : vector<65x64xf32>
    %c0_18 = arith.constant 0 : index
    %c0_19 = arith.constant 0 : index
    %66 = vector.load %arg10[%c0_18, %c0_19] : memref<65x64xf32, #tpu.memory_space<vmem>>, vector<65x64xf32>
    %67 = arith.addf %60, %65 : vector<65x64xf32>
    %68 = arith.addf %66, %67 : vector<65x64xf32>
    %c0_20 = arith.constant 0 : index
    %c0_21 = arith.constant 0 : index
    %69 = vector.load %arg10[%c0_20, %c0_21] : memref<65x64xf32, #tpu.memory_space<vmem>>, vector<65x64xf32>
    tpu.vector_store %arg10[%c0_20, %c0_21], %68 {strides = array<i32>} : memref<65x64xf32, #tpu.memory_space<vmem>>, vector<65x64xf32>,
    %c0_i32_22 = arith.constant 0 : i32
    %70 = arith.cmpi eq, %arg0, %c0_i32_22 : i32
    %71 = arith.extui %70 : i1 to i32
    %c0_i32_23 = arith.constant 0 : i32
    %72 = arith.cmpi ne, %71, %c0_i32_23 : i32
    scf.if %72 {
      %c0_112 = arith.constant 0 : index
      %c0_113 = arith.constant 0 : index
      %205 = vector.load %arg7[%c0_112, %c0_113] : memref<65x32xf32, #tpu.memory_space<vmem>>, vector<65x32xf32>
      %c0_114 = arith.constant 0 : index
      %c0_115 = arith.constant 0 : index
      %206 = vector.load %arg11[%c0_114, %c0_115] : memref<65x32xf32, #tpu.memory_space<vmem>>, vector<65x32xf32>
      tpu.vector_store %arg11[%c0_114, %c0_115], %205 {strides = array<i32>} : memref<65x32xf32, #tpu.memory_space<vmem>>, vector<65x32xf32>,
    } else {
    }
    %c0_24 = arith.constant 0 : index
    %c0_25 = arith.constant 0 : index
    %c0_26 = arith.constant 0 : index
    %73 = vector.load %arg3[%c0_24, %c0_25, %c0_26] : memref<8x65x32xf32, #tpu.memory_space<vmem>>, vector<1x65x32xf32>
    %74 = vector.shape_cast %73 : vector<1x65x32xf32> to vector<65x32xf32>
    %75 = vector.broadcast %3 : f32 to vector<65x32xf32>
    %76 = arith.mulf %75, %74 : vector<65x32xf32>
    %c1_27 = arith.constant 1 : index
    %c0_28 = arith.constant 0 : index
    %c0_29 = arith.constant 0 : index
    %77 = vector.load %arg3[%c1_27, %c0_28, %c0_29] : memref<8x65x32xf32, #tpu.memory_space<vmem>>, vector<1x65x32xf32>
    %78 = vector.shape_cast %77 : vector<1x65x32xf32> to vector<65x32xf32>
    %79 = vector.broadcast %6 : f32 to vector<65x32xf32>
    %80 = arith.mulf %79, %78 : vector<65x32xf32>
    %c2_30 = arith.constant 2 : index
    %c0_31 = arith.constant 0 : index
    %c0_32 = arith.constant 0 : index
    %81 = vector.load %arg3[%c2_30, %c0_31, %c0_32] : memref<8x65x32xf32, #tpu.memory_space<vmem>>, vector<1x65x32xf32>
    %82 = vector.shape_cast %81 : vector<1x65x32xf32> to vector<65x32xf32>
    %83 = vector.broadcast %9 : f32 to vector<65x32xf32>
    %84 = arith.mulf %83, %82 : vector<65x32xf32>
    %85 = arith.addf %76, %84 : vector<65x32xf32>
    %c3_33 = arith.constant 3 : index
    %c0_34 = arith.constant 0 : index
    %c0_35 = arith.constant 0 : index
    %86 = vector.load %arg3[%c3_33, %c0_34, %c0_35] : memref<8x65x32xf32, #tpu.memory_space<vmem>>, vector<1x65x32xf32>
    %87 = vector.shape_cast %86 : vector<1x65x32xf32> to vector<65x32xf32>
    %88 = vector.broadcast %12 : f32 to vector<65x32xf32>
    %89 = arith.mulf %88, %87 : vector<65x32xf32>
    %90 = arith.addf %80, %89 : vector<65x32xf32>
    %c4_36 = arith.constant 4 : index
    %c0_37 = arith.constant 0 : index
    %c0_38 = arith.constant 0 : index
    %91 = vector.load %arg3[%c4_36, %c0_37, %c0_38] : memref<8x65x32xf32, #tpu.memory_space<vmem>>, vector<1x65x32xf32>
    %92 = vector.shape_cast %91 : vector<1x65x32xf32> to vector<65x32xf32>
    %93 = vector.broadcast %15 : f32 to vector<65x32xf32>
    %94 = arith.mulf %93, %92 : vector<65x32xf32>
    %95 = arith.addf %85, %94 : vector<65x32xf32>
    %c5_39 = arith.constant 5 : index
    %c0_40 = arith.constant 0 : index
    %c0_41 = arith.constant 0 : index
    %96 = vector.load %arg3[%c5_39, %c0_40, %c0_41] : memref<8x65x32xf32, #tpu.memory_space<vmem>>, vector<1x65x32xf32>
    %97 = vector.shape_cast %96 : vector<1x65x32xf32> to vector<65x32xf32>
    %98 = vector.broadcast %18 : f32 to vector<65x32xf32>
    %99 = arith.mulf %98, %97 : vector<65x32xf32>
    %100 = arith.addf %90, %99 : vector<65x32xf32>
    %c6_42 = arith.constant 6 : index
    %c0_43 = arith.constant 0 : index
    %c0_44 = arith.constant 0 : index
    %101 = vector.load %arg3[%c6_42, %c0_43, %c0_44] : memref<8x65x32xf32, #tpu.memory_space<vmem>>, vector<1x65x32xf32>
    %102 = vector.shape_cast %101 : vector<1x65x32xf32> to vector<65x32xf32>
    %103 = vector.broadcast %21 : f32 to vector<65x32xf32>
    %104 = arith.mulf %103, %102 : vector<65x32xf32>
    %105 = arith.addf %95, %104 : vector<65x32xf32>
    %c7_45 = arith.constant 7 : index
    %c0_46 = arith.constant 0 : index
    %c0_47 = arith.constant 0 : index
    %106 = vector.load %arg3[%c7_45, %c0_46, %c0_47] : memref<8x65x32xf32, #tpu.memory_space<vmem>>, vector<1x65x32xf32>
    %107 = vector.shape_cast %106 : vector<1x65x32xf32> to vector<65x32xf32>
    %108 = vector.broadcast %24 : f32 to vector<65x32xf32>
    %109 = arith.mulf %108, %107 : vector<65x32xf32>
    %110 = arith.addf %100, %109 : vector<65x32xf32>
    %c0_48 = arith.constant 0 : index
    %c0_49 = arith.constant 0 : index
    %111 = vector.load %arg11[%c0_48, %c0_49] : memref<65x32xf32, #tpu.memory_space<vmem>>, vector<65x32xf32>
    %112 = arith.addf %105, %110 : vector<65x32xf32>
    %113 = arith.addf %111, %112 : vector<65x32xf32>
    %c0_50 = arith.constant 0 : index
    %c0_51 = arith.constant 0 : index
    %114 = vector.load %arg11[%c0_50, %c0_51] : memref<65x32xf32, #tpu.memory_space<vmem>>, vector<65x32xf32>
    tpu.vector_store %arg11[%c0_50, %c0_51], %113 {strides = array<i32>} : memref<65x32xf32, #tpu.memory_space<vmem>>, vector<65x32xf32>,
    %c0_i32_52 = arith.constant 0 : i32
    %115 = arith.cmpi eq, %arg0, %c0_i32_52 : i32
    %116 = arith.extui %115 : i1 to i32
    %c0_i32_53 = arith.constant 0 : i32
    %117 = arith.cmpi ne, %116, %c0_i32_53 : i32
    scf.if %117 {
      %c0_112 = arith.constant 0 : index
      %c0_113 = arith.constant 0 : index
      %205 = vector.load %arg8[%c0_112, %c0_113] : memref<33x64xf32, #tpu.memory_space<vmem>>, vector<33x64xf32>
      %c0_114 = arith.constant 0 : index
      %c0_115 = arith.constant 0 : index
      %206 = vector.load %arg12[%c0_114, %c0_115] : memref<33x64xf32, #tpu.memory_space<vmem>>, vector<33x64xf32>
      tpu.vector_store %arg12[%c0_114, %c0_115], %205 {strides = array<i32>} : memref<33x64xf32, #tpu.memory_space<vmem>>, vector<33x64xf32>,
    } else {
    }
    %c0_54 = arith.constant 0 : index
    %c0_55 = arith.constant 0 : index
    %c0_56 = arith.constant 0 : index
    %118 = vector.load %arg4[%c0_54, %c0_55, %c0_56] : memref<8x33x64xf32, #tpu.memory_space<vmem>>, vector<1x33x64xf32>
    %119 = vector.shape_cast %118 : vector<1x33x64xf32> to vector<33x64xf32>
    %120 = vector.broadcast %3 : f32 to vector<33x64xf32>
    %121 = arith.mulf %120, %119 : vector<33x64xf32>
    %c1_57 = arith.constant 1 : index
    %c0_58 = arith.constant 0 : index
    %c0_59 = arith.constant 0 : index
    %122 = vector.load %arg4[%c1_57, %c0_58, %c0_59] : memref<8x33x64xf32, #tpu.memory_space<vmem>>, vector<1x33x64xf32>
    %123 = vector.shape_cast %122 : vector<1x33x64xf32> to vector<33x64xf32>
    %124 = vector.broadcast %6 : f32 to vector<33x64xf32>
    %125 = arith.mulf %124, %123 : vector<33x64xf32>
    %c2_60 = arith.constant 2 : index
    %c0_61 = arith.constant 0 : index
    %c0_62 = arith.constant 0 : index
    %126 = vector.load %arg4[%c2_60, %c0_61, %c0_62] : memref<8x33x64xf32, #tpu.memory_space<vmem>>, vector<1x33x64xf32>
    %127 = vector.shape_cast %126 : vector<1x33x64xf32> to vector<33x64xf32>
    %128 = vector.broadcast %9 : f32 to vector<33x64xf32>
    %129 = arith.mulf %128, %127 : vector<33x64xf32>
    %130 = arith.addf %121, %129 : vector<33x64xf32>
    %c3_63 = arith.constant 3 : index
    %c0_64 = arith.constant 0 : index
    %c0_65 = arith.constant 0 : index
    %131 = vector.load %arg4[%c3_63, %c0_64, %c0_65] : memref<8x33x64xf32, #tpu.memory_space<vmem>>, vector<1x33x64xf32>
    %132 = vector.shape_cast %131 : vector<1x33x64xf32> to vector<33x64xf32>
    %133 = vector.broadcast %12 : f32 to vector<33x64xf32>
    %134 = arith.mulf %133, %132 : vector<33x64xf32>
    %135 = arith.addf %125, %134 : vector<33x64xf32>
    %c4_66 = arith.constant 4 : index
    %c0_67 = arith.constant 0 : index
    %c0_68 = arith.constant 0 : index
    %136 = vector.load %arg4[%c4_66, %c0_67, %c0_68] : memref<8x33x64xf32, #tpu.memory_space<vmem>>, vector<1x33x64xf32>
    %137 = vector.shape_cast %136 : vector<1x33x64xf32> to vector<33x64xf32>
    %138 = vector.broadcast %15 : f32 to vector<33x64xf32>
    %139 = arith.mulf %138, %137 : vector<33x64xf32>
    %140 = arith.addf %130, %139 : vector<33x64xf32>
    %c5_69 = arith.constant 5 : index
    %c0_70 = arith.constant 0 : index
    %c0_71 = arith.constant 0 : index
    %141 = vector.load %arg4[%c5_69, %c0_70, %c0_71] : memref<8x33x64xf32, #tpu.memory_space<vmem>>, vector<1x33x64xf32>
    %142 = vector.shape_cast %141 : vector<1x33x64xf32> to vector<33x64xf32>
    %143 = vector.broadcast %18 : f32 to vector<33x64xf32>
    %144 = arith.mulf %143, %142 : vector<33x64xf32>
    %145 = arith.addf %135, %144 : vector<33x64xf32>
    %c6_72 = arith.constant 6 : index
    %c0_73 = arith.constant 0 : index
    %c0_74 = arith.constant 0 : index
    %146 = vector.load %arg4[%c6_72, %c0_73, %c0_74] : memref<8x33x64xf32, #tpu.memory_space<vmem>>, vector<1x33x64xf32>
    %147 = vector.shape_cast %146 : vector<1x33x64xf32> to vector<33x64xf32>
    %148 = vector.broadcast %21 : f32 to vector<33x64xf32>
    %149 = arith.mulf %148, %147 : vector<33x64xf32>
    %150 = arith.addf %140, %149 : vector<33x64xf32>
    %c7_75 = arith.constant 7 : index
    %c0_76 = arith.constant 0 : index
    %c0_77 = arith.constant 0 : index
    %151 = vector.load %arg4[%c7_75, %c0_76, %c0_77] : memref<8x33x64xf32, #tpu.memory_space<vmem>>, vector<1x33x64xf32>
    %152 = vector.shape_cast %151 : vector<1x33x64xf32> to vector<33x64xf32>
    %153 = vector.broadcast %24 : f32 to vector<33x64xf32>
    %154 = arith.mulf %153, %152 : vector<33x64xf32>
    %155 = arith.addf %145, %154 : vector<33x64xf32>
    %c0_78 = arith.constant 0 : index
    %c0_79 = arith.constant 0 : index
    %156 = vector.load %arg12[%c0_78, %c0_79] : memref<33x64xf32, #tpu.memory_space<vmem>>, vector<33x64xf32>
    %157 = arith.addf %150, %155 : vector<33x64xf32>
    %158 = arith.addf %156, %157 : vector<33x64xf32>
    %c0_80 = arith.constant 0 : index
    %c0_81 = arith.constant 0 : index
    %159 = vector.load %arg12[%c0_80, %c0_81] : memref<33x64xf32, #tpu.memory_space<vmem>>, vector<33x64xf32>
    tpu.vector_store %arg12[%c0_80, %c0_81], %158 {strides = array<i32>} : memref<33x64xf32, #tpu.memory_space<vmem>>, vector<33x64xf32>,
    %c0_i32_82 = arith.constant 0 : i32
    %160 = arith.cmpi eq, %arg0, %c0_i32_82 : i32
    %161 = arith.extui %160 : i1 to i32
    %c0_i32_83 = arith.constant 0 : i32
    %162 = arith.cmpi ne, %161, %c0_i32_83 : i32
    scf.if %162 {
      %c0_112 = arith.constant 0 : index
      %c0_113 = arith.constant 0 : index
      %205 = vector.load %arg9[%c0_112, %c0_113] : memref<65x16xf32, #tpu.memory_space<vmem>>, vector<65x16xf32>
      %c0_114 = arith.constant 0 : index
      %c0_115 = arith.constant 0 : index
      %206 = vector.load %arg13[%c0_114, %c0_115] : memref<65x16xf32, #tpu.memory_space<vmem>>, vector<65x16xf32>
      tpu.vector_store %arg13[%c0_114, %c0_115], %205 {strides = array<i32>} : memref<65x16xf32, #tpu.memory_space<vmem>>, vector<65x16xf32>,
    } else {
    }
    %c0_84 = arith.constant 0 : index
    %c0_85 = arith.constant 0 : index
    %c0_86 = arith.constant 0 : index
    %163 = vector.load %arg5[%c0_84, %c0_85, %c0_86] : memref<8x65x16xf32, #tpu.memory_space<vmem>>, vector<1x65x16xf32>
    %164 = vector.shape_cast %163 : vector<1x65x16xf32> to vector<65x16xf32>
    %165 = vector.broadcast %3 : f32 to vector<65x16xf32>
    %166 = arith.mulf %165, %164 : vector<65x16xf32>
    %c1_87 = arith.constant 1 : index
    %c0_88 = arith.constant 0 : index
    %c0_89 = arith.constant 0 : index
    %167 = vector.load %arg5[%c1_87, %c0_88, %c0_89] : memref<8x65x16xf32, #tpu.memory_space<vmem>>, vector<1x65x16xf32>
    %168 = vector.shape_cast %167 : vector<1x65x16xf32> to vector<65x16xf32>
    %169 = vector.broadcast %6 : f32 to vector<65x16xf32>
    %170 = arith.mulf %169, %168 : vector<65x16xf32>
    %c2_90 = arith.constant 2 : index
    %c0_91 = arith.constant 0 : index
    %c0_92 = arith.constant 0 : index
    %171 = vector.load %arg5[%c2_90, %c0_91, %c0_92] : memref<8x65x16xf32, #tpu.memory_space<vmem>>, vector<1x65x16xf32>
    %172 = vector.shape_cast %171 : vector<1x65x16xf32> to vector<65x16xf32>
    %173 = vector.broadcast %9 : f32 to vector<65x16xf32>
    %174 = arith.mulf %173, %172 : vector<65x16xf32>
    %175 = arith.addf %166, %174 : vector<65x16xf32>
    %c3_93 = arith.constant 3 : index
    %c0_94 = arith.constant 0 : index
    %c0_95 = arith.constant 0 : index
    %176 = vector.load %arg5[%c3_93, %c0_94, %c0_95] : memref<8x65x16xf32, #tpu.memory_space<vmem>>, vector<1x65x16xf32>
    %177 = vector.shape_cast %176 : vector<1x65x16xf32> to vector<65x16xf32>
    %178 = vector.broadcast %12 : f32 to vector<65x16xf32>
    %179 = arith.mulf %178, %177 : vector<65x16xf32>
    %180 = arith.addf %170, %179 : vector<65x16xf32>
    %c4_96 = arith.constant 4 : index
    %c0_97 = arith.constant 0 : index
    %c0_98 = arith.constant 0 : index
    %181 = vector.load %arg5[%c4_96, %c0_97, %c0_98] : memref<8x65x16xf32, #tpu.memory_space<vmem>>, vector<1x65x16xf32>
    %182 = vector.shape_cast %181 : vector<1x65x16xf32> to vector<65x16xf32>
    %183 = vector.broadcast %15 : f32 to vector<65x16xf32>
    %184 = arith.mulf %183, %182 : vector<65x16xf32>
    %185 = arith.addf %175, %184 : vector<65x16xf32>
    %c5_99 = arith.constant 5 : index
    %c0_100 = arith.constant 0 : index
    %c0_101 = arith.constant 0 : index
    %186 = vector.load %arg5[%c5_99, %c0_100, %c0_101] : memref<8x65x16xf32, #tpu.memory_space<vmem>>, vector<1x65x16xf32>
    %187 = vector.shape_cast %186 : vector<1x65x16xf32> to vector<65x16xf32>
    %188 = vector.broadcast %18 : f32 to vector<65x16xf32>
    %189 = arith.mulf %188, %187 : vector<65x16xf32>
    %190 = arith.addf %180, %189 : vector<65x16xf32>
    %c6_102 = arith.constant 6 : index
    %c0_103 = arith.constant 0 : index
    %c0_104 = arith.constant 0 : index
    %191 = vector.load %arg5[%c6_102, %c0_103, %c0_104] : memref<8x65x16xf32, #tpu.memory_space<vmem>>, vector<1x65x16xf32>
    %192 = vector.shape_cast %191 : vector<1x65x16xf32> to vector<65x16xf32>
    %193 = vector.broadcast %21 : f32 to vector<65x16xf32>
    %194 = arith.mulf %193, %192 : vector<65x16xf32>
    %195 = arith.addf %185, %194 : vector<65x16xf32>
    %c7_105 = arith.constant 7 : index
    %c0_106 = arith.constant 0 : index
    %c0_107 = arith.constant 0 : index
    %196 = vector.load %arg5[%c7_105, %c0_106, %c0_107] : memref<8x65x16xf32, #tpu.memory_space<vmem>>, vector<1x65x16xf32>
    %197 = vector.shape_cast %196 : vector<1x65x16xf32> to vector<65x16xf32>
    %198 = vector.broadcast %24 : f32 to vector<65x16xf32>
    %199 = arith.mulf %198, %197 : vector<65x16xf32>
    %200 = arith.addf %190, %199 : vector<65x16xf32>
    %c0_108 = arith.constant 0 : index
    %c0_109 = arith.constant 0 : index
    %201 = vector.load %arg13[%c0_108, %c0_109] : memref<65x16xf32, #tpu.memory_space<vmem>>, vector<65x16xf32>
    %202 = arith.addf %195, %200 : vector<65x16xf32>
    %203 = arith.addf %201, %202 : vector<65x16xf32>
    %c0_110 = arith.constant 0 : index
    %c0_111 = arith.constant 0 : index
    %204 = vector.load %arg13[%c0_110, %c0_111] : memref<65x16xf32, #tpu.memory_space<vmem>>, vector<65x16xf32>
    tpu.vector_store %arg13[%c0_110, %c0_111], %203 {strides = array<i32>} : memref<65x16xf32, #tpu.memory_space<vmem>>, vector<65x16xf32>,
    return
  }
  func.func @transform_0(%arg0: i32) -> i32 {
    %c0_i32 = arith.constant 0 : i32
    %c0_i32_0 = arith.constant 0 : i32
    return %c0_i32 : i32
  }
  func.func @transform_1(%arg0: i32) -> (i32, i32, i32) {
    %c0_i32 = arith.constant 0 : i32
    %c0_i32_0 = arith.constant 0 : i32
    %c0_i32_1 = arith.constant 0 : i32
    return %arg0, %c0_i32, %c0_i32_0 : i32, i32, i32
  }
  func.func @transform_2(%arg0: i32) -> (i32, i32, i32) {
    %c0_i32 = arith.constant 0 : i32
    %c0_i32_0 = arith.constant 0 : i32
    %c0_i32_1 = arith.constant 0 : i32
    return %arg0, %c0_i32, %c0_i32_0 : i32, i32, i32
  }
  func.func @transform_3(%arg0: i32) -> (i32, i32, i32) {
    %c0_i32 = arith.constant 0 : i32
    %c0_i32_0 = arith.constant 0 : i32
    %c0_i32_1 = arith.constant 0 : i32
    return %arg0, %c0_i32, %c0_i32_0 : i32, i32, i32
  }
  func.func @transform_4(%arg0: i32) -> (i32, i32, i32) {
    %c0_i32 = arith.constant 0 : i32
    %c0_i32_0 = arith.constant 0 : i32
    %c0_i32_1 = arith.constant 0 : i32
    return %arg0, %c0_i32, %c0_i32_0 : i32, i32, i32
  }
  func.func @transform_5(%arg0: i32) -> (i32, i32) {
    %c0_i32 = arith.constant 0 : i32
    %c0_i32_0 = arith.constant 0 : i32
    %c0_i32_1 = arith.constant 0 : i32
    return %c0_i32, %c0_i32_0 : i32, i32
  }
  func.func @transform_6(%arg0: i32) -> (i32, i32) {
    %c0_i32 = arith.constant 0 : i32
    %c0_i32_0 = arith.constant 0 : i32
    %c0_i32_1 = arith.constant 0 : i32
    return %c0_i32, %c0_i32_0 : i32, i32
  }
  func.func @transform_7(%arg0: i32) -> (i32, i32) {
    %c0_i32 = arith.constant 0 : i32
    %c0_i32_0 = arith.constant 0 : i32
    %c0_i32_1 = arith.constant 0 : i32
    return %c0_i32, %c0_i32_0 : i32, i32
  }
  func.func @transform_8(%arg0: i32) -> (i32, i32) {
    %c0_i32 = arith.constant 0 : i32
    %c0_i32_0 = arith.constant 0 : i32
    %c0_i32_1 = arith.constant 0 : i32
    return %c0_i32, %c0_i32_0 : i32, i32
  }
  func.func @transform_9(%arg0: i32) -> (i32, i32) {
    %c0_i32 = arith.constant 0 : i32
    %c0_i32_0 = arith.constant 0 : i32
    %c0_i32_1 = arith.constant 0 : i32
    return %c0_i32, %c0_i32_0 : i32, i32
  }
  func.func @transform_10(%arg0: i32) -> (i32, i32) {
    %c0_i32 = arith.constant 0 : i32
    %c0_i32_0 = arith.constant 0 : i32
    %c0_i32_1 = arith.constant 0 : i32
    return %c0_i32, %c0_i32_0 : i32, i32
  }
  func.func @transform_11(%arg0: i32) -> (i32, i32) {
    %c0_i32 = arith.constant 0 : i32
    %c0_i32_0 = arith.constant 0 : i32
    %c0_i32_1 = arith.constant 0 : i32
    return %c0_i32, %c0_i32_0 : i32, i32
  }
  func.func @transform_12(%arg0: i32) -> (i32, i32) {
    %c0_i32 = arith.constant 0 : i32
    %c0_i32_0 = arith.constant 0 : i32
    %c0_i32_1 = arith.constant 0 : i32
    return %c0_i32, %c0_i32_0 : i32, i32
  }
}

</mosaic_0001>

<bundles_post_ra>
// kernel: generate_weights.1
= control target key start
LH: loop header
LB: loop body
LE: loop exit
PB: predicated region body
PF: predicated region fallthrough
CT: control target
= control target key end

     0   :  { %s3017_s0 = inlined_call_operand.vmem [shape: f32[32], index: 0, kind: input, shape index: {}]   ;;  %s3018_s1 = inlined_call_operand.vmem [shape: f32[32,65,64], index: 1, kind: input, shape index: {}]   ;;  %s3019_s2 = inlined_call_operand.vmem [shape: f32[32,65,32], index: 2, kind: input, shape index: {}]   ;;  %s3020_s3 = inlined_call_operand.vmem [shape: f32[32,33,64], index: 3, kind: input, shape index: {}]   ;;  %s3021_s4 = inlined_call_operand.vmem [shape: f32[32,65,16], index: 4, kind: input, shape index: {}]   ;;  %s3022_s5 = inlined_call_operand.vmem [shape: f32[65,64], index: 5, kind: input, shape index: {}]   ;;  %s3023_s6 = inlined_call_operand.vmem [shape: f32[65,32], index: 6, kind: input, shape index: {}]   ;;  %s3024_s7 = inlined_call_operand.vmem [shape: f32[33,64], index: 7, kind: input, shape index: {}]   ;;  %s3025_s8 = inlined_call_operand.vmem [shape: f32[65,16], index: 8, kind: input, shape index: {}]   ;;  %s3026_s9 = inlined_call_operand.vmem [shape: f32[65,64], index: 9, kind: output, shape index: {0}]   ;;  %s3027_s10 = inlined_call_operand.vmem [shape: f32[65,32], index: 10, kind: output, shape index: {1}]   ;;  %s3028_s11 = inlined_call_operand.hbm [shape: f32[33,64], index: 11, kind: output, shape index: {2}]   ;;  %s3029_s12 = inlined_call_operand.vmem [shape: f32[65,16], index: 12, kind: output, shape index: {3}]  }
   0x1   :  { %3035 = sst [smem:[#allocation9_spill]] %s3017_s0 }
   0x2   :  { %3036 = sst [smem:[#allocation10_spill]] %s3018_s1 }
   0x3   :  { %3037 = sst [smem:[#allocation11_spill]] %s3019_s2 }
   0x4   :  { %3038 = sst [smem:[#allocation12_spill]] %s3025_s8 }
   0x5   :  { %3039 = sst [smem:[#allocation13_spill]] %s3028_s11 }
   0x6   :  { %3040 = sst [smem:[#allocation14_spill]] %s3029_s12 }
   0x7   :  { %18 = vsyncpa [#allocation4], 0 }
   0x8   :  { %19 = vsyncpa [#allocation3], 0  ;;  %s1976_s21 = smov 0  }
   0x9 LB: > { %3041 = sst [smem:[#allocation8_spill]] %s1905_s21  ;;  %s1982_s22 = sadd.s32 4294967295, %s1905_s21   ;;  %s1905_s21 = sphi %s1976_s21, %s25_s21  }
   0xa   : > { %p1574_p0 = scmp.ge.s32.totalorder %s1905_s21, 1  ;;  %p323_p1 = scmp.lt.s32.totalorder %s1905_s21, 5 }
   0xb   : > { %s3042_s0 = sld [smem:[#allocation9_spill]]  ;;  %p1834_p4 = scmp.eq.s32.totalorder %s1982_s22, 0 }
   0xc   : > { %p1990_p3 = pnand %p1574_p0, %p323_p1 }
   0xe   : > { %p1830_p5 = pneg %p1990_p3 }
  0x10   : > { %p1831_p6 = pnand %p1834_p4, %p1830_p5 }
  0x11   : > { %s336_s25 = sshll.u32 %s3042_s0, 4  ;;  %s337_s25 = int_to_ptr.vmem [resolvable:$true] %s336_s25 }
  0x12   : > { %s1850_s27 = scalar_lea.vmem %s337_s25, 16  ;;  %p1852_p8 = pneg %p1831_p6 }
  0x13   : > { %p1851_p7 = scmp.ne.s32.totalorder %s337_s25, %s1850_s27  ;;  %p1858_p11 = scmp.lt.s32.totalorder %s337_s25, %s337_s25 }
  0x14   : > { %p1859_p12 = scmp.lt.s32.totalorder %s1850_s27, %s1850_s27 }
  0x15   : > { %p1853_p9 = pnand %p1852_p8, %p1851_p7 }
  0x16   : > { %p1860_p13 = por %p1859_p12, %p1858_p11 }
  0x17   : > { %p1854_p10 = pneg %p1853_p9 }
  0x19   : > { %p1861_p2 = pnand %p1860_p13, %p1854_p10 }
  0x1b   : > { %1864 = shalt.err (!%p1861_p2)
}
  0x1c   : > { %s1907_s28 = smov [#allocation2]   ;;  %401 = sbr.rel (%p1990_p3) target bundleno = 243 (0xf3), region = 56 }
  0x1d   : > { %1833 = dma.vmem_to_smem (!%p1831_p6), %s337_s25, 16, %s1907_s28, [#allocation4]  }
  0x23   : > { %1896 = dma.done.wait (%p1834_p4), [#allocation4], 16  }
  0x24   : > { %1898 = vsyncadd (%p1834_p4), [#allocation4], 4294967280 }
  0x25   : > { %407 = sfence }
  0x26   : > { %s1579_s29 = sshll.u32 %s1982_s22, 3  ;;  %s3044_s1 = sld [smem:[#allocation10_spill]] }
  0x27   : > { %p459_p0 = scmp.lt.s32.totalorder %s1579_s29, 31  ;;  %s2006_s30 = sld [smem:[#allocation2 + %s1579_s29]] }
  0x28   : > { %s488_s13 = sadd.s32 1, %s1579_s29  ;;  %s490_s14 = sadd.s32 2, %s1579_s29 }
  0x29   : > { %s460_s15 = scalar_select %p459_p0, %s1579_s29, 31 }
  0x2a   : > { %s2008_s16 = sld [smem:[#allocation2 + %s488_s13]]  ;;  %s492_s19 = sadd.s32 3, %s1579_s29 }
  0x2b   : > { %s2010_s17 = sld [smem:[#allocation2 + %s490_s14]]  ;;  %s1820_s18 = smul.u32 72, %s460_s15 }
  0x2c   : > { %s1821_s20 = smul.u32 40, %s460_s15  ;;  %s2012_s23 = sld [smem:[#allocation2 + %s492_s19]] }
  0x2d   : > { %s2017_s26 = scalar_lea.vmem %s3044_s1, %s1820_s18  ;;  %s3045_s2 = sld [smem:[#allocation11_spill]] }
  0x2e   : > { %s2027_s14 = scalar_lea.vmem %s3020_s3, %s1821_s20  ;;  %s2032_s15 = scalar_lea.vmem %s3021_s4, %s1820_s18 }
  0x2f   : > { %s494_s19 = sadd.s32 4, %s1579_s29  ;;  %s496_s8 = sadd.s32 5, %s1579_s29 }
  0x30   : > { %s2034_s24 = sld [smem:[#allocation2 + %s494_s19]]  ;;  %s498_s1 = sadd.s32 6, %s1579_s29 }
  0x31   : > { %s2036_s25 = sld [smem:[#allocation2 + %s496_s8]]  ;;  %s500_s27 = sadd.s32 7, %s1579_s29 }
  0x32   : > { %s2038_s28 = sld [smem:[#allocation2 + %s498_s1]]  ;;  %p3046_p1 = scmp.ne.s32.totalorder %s1982_s22, 0 }
  0x33   : > { %s2022_s0 = scalar_lea.vmem %s3045_s2, %s1820_s18  ;;  %s2040_s2 = sld [smem:[#allocation2 + %s500_s27]]  ;;  %v506_v0 = vld [vmem:[%s3022_s5] sm:$0xff] (!%p3046_p1)  ;;  %vm515_vm0 = vcmask (!%p3046_p1), 523264   ;;  %v507_v1 = vld [vmem:[%s3022_s5 + $0x8] sm:$0xff] (!%p3046_p1)  ;;  %v508_v2 = vld [vmem:[%s3022_s5 + $0x10] sm:$0xff] (!%p3046_p1)  ;;  %vm524_vm1 = vcmask (!%p3046_p1), 516096  }
  0x34   : > { %505 = sbr.rel (%p3046_p1) target bundleno = 59 (0x3b), region = 64  ;;  %516 = vst.msk [vmem:[%s3026_s9] sm:$0xff] (!%p3046_p1), %vm515_vm0, %v506_v0  ;;  %517 = vst.msk [vmem:[%s3026_s9 + $0x8] sm:$0xff] (!%p3046_p1), %vm515_vm0, %v507_v1  ;;  %v509_v3 = vld [vmem:[%s3022_s5 + $0x18] sm:$0xff] (!%p3046_p1)  ;;  %v510_v4 = vld [vmem:[%s3022_s5 + $0x20] sm:$0xff] (!%p3046_p1) }
  0x35   : > { %518 = vst.msk [vmem:[%s3026_s9 + $0x10] sm:$0xff] (!%p3046_p1), %vm515_vm0, %v508_v2  ;;  %v511_v5 = vld [vmem:[%s3022_s5 + $0x28] sm:$0xff] (!%p3046_p1)  ;;  %519 = vst.msk [vmem:[%s3026_s9 + $0x18] sm:$0xff] (!%p3046_p1), %vm515_vm0, %v509_v3  ;;  %v512_v6 = vld [vmem:[%s3022_s5 + $0x30] sm:$0xff] (!%p3046_p1) }
  0x36   : > { %520 = vst.msk [vmem:[%s3026_s9 + $0x20] sm:$0xff] (!%p3046_p1), %vm515_vm0, %v510_v4  ;;  %521 = vst.msk [vmem:[%s3026_s9 + $0x28] sm:$0xff] (!%p3046_p1), %vm515_vm0, %v511_v5  ;;  %v513_v7 = vld [vmem:[%s3022_s5 + $0x38] sm:$0xff] (!%p3046_p1)  ;;  %v514_v8 = vld [vmem:[%s3022_s5 + $0x40] sm:$0x1] (!%p3046_p1) }
  0x37   : > { %522 = vst.msk [vmem:[%s3026_s9 + $0x30] sm:$0xff] (!%p3046_p1), %vm515_vm0, %v512_v6  ;;  %523 = vst.msk [vmem:[%s3026_s9 + $0x38] sm:$0xff] (!%p3046_p1), %vm515_vm0, %v513_v7 }
  0x38   : > { %525 = vst.msk [vmem:[%s3026_s9 + $0x40] sm:$0x1] (!%p3046_p1), %vm524_vm1, %v514_v8 }
  0x3b PF: > { %v526_v9 = vld [vmem:[%s2017_s26] sm:$0xff]  ;;  %v2108_v10 = vstv %s2006_s30  ;;  %v1589_v11 = vld [vmem:[%s2017_s26 + $0x48] sm:$0xff]  ;;  %v2112_v12 = vstv %s2008_s16  ;;  %vm766_vm2 = vcmask 523264   ;;  %vm775_vm3 = vcmask 516096   ;;  %p3047_p2 = scmp.ne.s32.totalorder %s1982_s22, 0 }
  0x3c   : > { %v536_v13 = vmul.f32 %v2108_v10, %v526_v9  ;;  %v556_v14 = vmul.f32 %v1589_v11, %v2112_v12  ;;  %v1598_v15 = vld [vmem:[%s2017_s26 + $0x90] sm:$0xff]  ;;  %v2118_v16 = vstv %s2010_s17  ;;  %v1607_v17 = vld [vmem:[%s2017_s26 + $0xd8] sm:$0xff]  ;;  %v2122_v18 = vstv %s2012_s23 }
  0x3d   : > { %v576_v19 = vmul.f32 %v1598_v15, %v2118_v16  ;;  %v605_v20 = vmul.f32 %v1607_v17, %v2122_v18  ;;  %v1616_v21 = vld [vmem:[%s2017_s26 + $0x120] sm:$0xff]  ;;  %v2128_v22 = vstv %s2034_s24  ;;  %v1625_v23 = vld [vmem:[%s2017_s26 + $0x168] sm:$0xff]  ;;  %v2132_v24 = vstv %s2036_s25 }
  0x3e   : > { %v634_v25 = vmul.f32 %v1616_v21, %v2128_v22  ;;  %v663_v26 = vmul.f32 %v1625_v23, %v2132_v24  ;;  %v1634_v27 = vld [vmem:[%s2017_s26 + $0x1b0] sm:$0xff]  ;;  %v2138_v28 = vstv %s2038_s28  ;;  %v1643_v29 = vld [vmem:[%s2017_s26 + $0x1f8] sm:$0xff]  ;;  %v2142_v30 = vstv %s2040_s2 }
  0x3f   : > { %v585_v31 = vadd.f32 %v576_v19, %v536_v13  ;;  %v614_v32 = vadd.f32 %v605_v20, %v556_v14  ;;  %v692_v33 = vmul.f32 %v1634_v27, %v2138_v28  ;;  %v721_v34 = vmul.f32 %v1643_v29, %v2142_v30  ;;  %v527_v35 = vld [vmem:[%s2017_s26 + $0x8] sm:$0xff]  ;;  %v1590_v36 = vld [vmem:[%s2017_s26 + $0x50] sm:$0xff]  ;;  %v1599_v39 = vld [vmem:[%s2017_s26 + $0x98] sm:$0xff] }
  0x40   : > { %v537_v37 = vmul.f32 %v2108_v10, %v527_v35  ;;  %v557_v38 = vmul.f32 %v1590_v36, %v2112_v12  ;;  %v1608_v40 = vld [vmem:[%s2017_s26 + $0xe0] sm:$0xff]  ;;  %v1617_v41 = vld [vmem:[%s2017_s26 + $0x128] sm:$0xff]  ;;  %v577_v44 = vmul.f32 %v1599_v39, %v2118_v16  ;;  %v1626_v46 = vld [vmem:[%s2017_s26 + $0x170] sm:$0xff]  ;;  %vm789_vm4 = vcmask (!%p3047_p2), 261120  }
  0x41   : > { %v643_v42 = vadd.f32 %v634_v25, %v585_v31  ;;  %v672_v43 = vadd.f32 %v663_v26, %v614_v32  ;;  %v606_v45 = vmul.f32 %v1608_v40, %v2122_v18  ;;  %v1635_v47 = vld [vmem:[%s2017_s26 + $0x1b8] sm:$0xff]  ;;  %v1644_v48 = vld [vmem:[%s2017_s26 + $0x200] sm:$0xff]  ;;  %v635_v50 = vmul.f32 %v1617_v41, %v2128_v22  ;;  %v528_v54 = vld [vmem:[%s2017_s26 + $0x10] sm:$0xff] }
  0x42   : > { %v739_v49 = vld [vmem:[%s3026_s9] sm:$0xff]  ;;  %v664_v51 = vmul.f32 %v1626_v46, %v2132_v24  ;;  %v693_v52 = vmul.f32 %v1635_v47, %v2138_v28  ;;  %v722_v53 = vmul.f32 %v1644_v48, %v2142_v30  ;;  %v1591_v55 = vld [vmem:[%s2017_s26 + $0x58] sm:$0xff]  ;;  %v586_v58 = vadd.f32 %v577_v44, %v537_v37  ;;  %v1609_v61 = vld [vmem:[%s2017_s26 + $0xe8] sm:$0xff] }
  0x43   : > { %v701_v56 = vadd.f32 %v692_v33, %v643_v42  ;;  %v730_v57 = vadd.f32 %v721_v34, %v672_v43  ;;  %v615_v59 = vadd.f32 %v606_v45, %v557_v38  ;;  %v1600_v60 = vld [vmem:[%s2017_s26 + $0xa0] sm:$0xff]  ;;  %v1618_v62 = vld [vmem:[%s2017_s26 + $0x130] sm:$0xff]  ;;  %v538_v63 = vmul.f32 %v2108_v10, %v528_v54  ;;  %v1627_v3 = vld [vmem:[%s2017_s26 + $0x178] sm:$0xff] }
  0x44   : > { %v558_v0 = vmul.f32 %v1591_v55, %v2112_v12  ;;  %v578_v1 = vmul.f32 %v1600_v60, %v2118_v16  ;;  %v607_v2 = vmul.f32 %v1609_v61, %v2122_v18  ;;  %v1636_v4 = vld [vmem:[%s2017_s26 + $0x1c0] sm:$0xff]  ;;  %v1645_v5 = vld [vmem:[%s2017_s26 + $0x208] sm:$0xff]  ;;  %v644_v7 = vadd.f32 %v635_v50, %v586_v58  ;;  %v529_v11 = vld [vmem:[%s2017_s26 + $0x18] sm:$0xff] }
  0x45   : > { %v748_v6 = vadd.f32 %v730_v57, %v701_v56  ;;  %v673_v8 = vadd.f32 %v664_v51, %v615_v59  ;;  %v636_v9 = vmul.f32 %v1618_v62, %v2128_v22  ;;  %v1592_v13 = vld [vmem:[%s2017_s26 + $0x60] sm:$0xff]  ;;  %v665_v17 = vmul.f32 %v1627_v3, %v2132_v24  ;;  %v1601_v20 = vld [vmem:[%s2017_s26 + $0xa8] sm:$0xff]  ;;  %v1610_v21 = vld [vmem:[%s2017_s26 + $0xf0] sm:$0xff] }
  0x46   : > { %v587_v14 = vadd.f32 %v578_v1, %v538_v63  ;;  %v616_v15 = vadd.f32 %v607_v2, %v558_v0  ;;  %v694_v19 = vmul.f32 %v1636_v4, %v2138_v28  ;;  %v1619_v23 = vld [vmem:[%s2017_s26 + $0x138] sm:$0xff]  ;;  %v702_v26 = vadd.f32 %v693_v52, %v644_v7  ;;  %v1628_v31 = vld [vmem:[%s2017_s26 + $0x180] sm:$0xff]  ;;  %v1637_v32 = vld [vmem:[%s2017_s26 + $0x1c8] sm:$0xff] }
  0x47   : > { %v757_v25 = vadd.f32 %v748_v6, %v739_v49  ;;  %v731_v27 = vadd.f32 %v722_v53, %v673_v8  ;;  %v723_v29 = vmul.f32 %v1645_v5, %v2142_v30  ;;  %v740_v33 = vld [vmem:[%s3026_s9 + $0x8] sm:$0xff]  ;;  %v539_v36 = vmul.f32 %v2108_v10, %v529_v11  ;;  %v1646_v38 = vld [vmem:[%s2017_s26 + $0x210] sm:$0xff]  ;;  %v530_v43 = vld [vmem:[%s2017_s26 + $0x20] sm:$0xff] }
  0x48   : > { %v645_v34 = vadd.f32 %v636_v9, %v587_v14  ;;  %v674_v35 = vadd.f32 %v665_v17, %v616_v15  ;;  %v559_v37 = vmul.f32 %v1592_v13, %v2112_v12  ;;  %v579_v40 = vmul.f32 %v1601_v20, %v2118_v16  ;;  %v1593_v44 = vld [vmem:[%s2017_s26 + $0x68] sm:$0xff]  ;;  %v1602_v45 = vld [vmem:[%s2017_s26 + $0xb0] sm:$0xff]  ;;  %v1611_v50 = vld [vmem:[%s2017_s26 + $0xf8] sm:$0xff] }
  0x49   : > { %767 = vst.msk [vmem:[%s3026_s9] sm:$0xff] %vm766_vm2, %v757_v25  ;;  %v749_v39 = vadd.f32 %v731_v27, %v702_v26  ;;  %v608_v41 = vmul.f32 %v1610_v21, %v2122_v18  ;;  %v637_v42 = vmul.f32 %v1619_v23, %v2128_v22  ;;  %v666_v48 = vmul.f32 %v1628_v31, %v2132_v24  ;;  %v1620_v51 = vld [vmem:[%s2017_s26 + $0x140] sm:$0xff]  ;;  %v741_v53 = vld [vmem:[%s3026_s9 + $0x10] sm:$0xff]  ;;  %v1629_v57 = vld [vmem:[%s2017_s26 + $0x188] sm:$0xff] }
  0x4a   : > { %v703_v46 = vadd.f32 %v694_v19, %v645_v34  ;;  %v732_v47 = vadd.f32 %v723_v29, %v674_v35  ;;  %v695_v49 = vmul.f32 %v1637_v32, %v2138_v28  ;;  %v588_v54 = vadd.f32 %v579_v40, %v539_v36  ;;  %v1638_v58 = vld [vmem:[%s2017_s26 + $0x1d0] sm:$0xff]  ;;  %v1647_v63 = vld [vmem:[%s2017_s26 + $0x218] sm:$0xff]  ;;  %v531_v4 = vld [vmem:[%s2017_s26 + $0x28] sm:$0xff] }
  0x4b   : > { %v758_v52 = vadd.f32 %v749_v39, %v740_v33  ;;  %v617_v55 = vadd.f32 %v608_v41, %v559_v37  ;;  %v724_v56 = vmul.f32 %v1646_v38, %v2142_v30  ;;  %v540_v60 = vmul.f32 %v2108_v10, %v530_v43  ;;  %v1594_v5 = vld [vmem:[%s2017_s26 + $0x70] sm:$0xff]  ;;  %v1603_v6 = vld [vmem:[%s2017_s26 + $0xb8] sm:$0xff]  ;;  %v1612_v13 = vld [vmem:[%s2017_s26 + $0x100] sm:$0xff] }
  0x4c   : > { %v750_v59 = vadd.f32 %v732_v47, %v703_v46  ;;  %v560_v61 = vmul.f32 %v1593_v44, %v2112_v12  ;;  %v580_v62 = vmul.f32 %v1602_v45, %v2118_v16  ;;  %v646_v0 = vadd.f32 %v637_v42, %v588_v54  ;;  %v1621_v14 = vld [vmem:[%s2017_s26 + $0x148] sm:$0xff]  ;;  %v1630_v21 = vld [vmem:[%s2017_s26 + $0x190] sm:$0xff]  ;;  %v1639_v23 = vld [vmem:[%s2017_s26 + $0x1d8] sm:$0xff] }
  0x4d   : > { %768 = vst.msk [vmem:[%s3026_s9 + $0x8] sm:$0xff] %vm766_vm2, %v758_v52  ;;  %v675_v1 = vadd.f32 %v666_v48, %v617_v55  ;;  %v609_v2 = vmul.f32 %v1611_v50, %v2122_v18  ;;  %v638_v3 = vmul.f32 %v1620_v51, %v2128_v22  ;;  %v667_v9 = vmul.f32 %v1629_v57, %v2132_v24  ;;  %v742_v25 = vld [vmem:[%s3026_s9 + $0x18] sm:$0xff]  ;;  %v1648_v32 = vld [vmem:[%s2017_s26 + $0x220] sm:$0xff]  ;;  %v532_v37 = vld [vmem:[%s2017_s26 + $0x30] sm:$0xff] }
  0x4e   : > { %v759_v7 = vadd.f32 %v750_v59, %v741_v53  ;;  %v589_v8 = vadd.f32 %v580_v62, %v540_v60  ;;  %v696_v11 = vmul.f32 %v1638_v58, %v2138_v28  ;;  %v704_v15 = vadd.f32 %v695_v49, %v646_v0  ;;  %v1595_v38 = vld [vmem:[%s2017_s26 + $0x78] sm:$0xff]  ;;  %v1604_v39 = vld [vmem:[%s2017_s26 + $0xc0] sm:$0xff]  ;;  %v1613_v44 = vld [vmem:[%s2017_s26 + $0x108] sm:$0xff] }
  0x4f   : > { %v733_v17 = vadd.f32 %v724_v56, %v675_v1  ;;  %v618_v19 = vadd.f32 %v609_v2, %v560_v61  ;;  %v725_v20 = vmul.f32 %v1647_v63, %v2142_v30  ;;  %v541_v27 = vmul.f32 %v2108_v10, %v531_v4  ;;  %v1622_v45 = vld [vmem:[%s2017_s26 + $0x150] sm:$0xff]  ;;  %v1631_v50 = vld [vmem:[%s2017_s26 + $0x198] sm:$0xff]  ;;  %v1640_v51 = vld [vmem:[%s2017_s26 + $0x1e0] sm:$0xff] }
  0x50   : > { %769 = vst.msk [vmem:[%s3026_s9 + $0x10] sm:$0xff] %vm766_vm2, %v759_v7  ;;  %v647_v26 = vadd.f32 %v638_v3, %v589_v8  ;;  %v561_v29 = vmul.f32 %v1594_v5, %v2112_v12  ;;  %v581_v31 = vmul.f32 %v1603_v6, %v2118_v16  ;;  %v610_v35 = vmul.f32 %v1612_v13, %v2122_v18  ;;  %v743_v52 = vld [vmem:[%s3026_s9 + $0x20] sm:$0xff]  ;;  %v1649_v57 = vld [vmem:[%s2017_s26 + $0x228] sm:$0xff]  ;;  %v533_v62 = vld [vmem:[%s2017_s26 + $0x38] sm:$0xff] }
  0x51   : > { %v751_v33 = vadd.f32 %v733_v17, %v704_v15  ;;  %v676_v34 = vadd.f32 %v667_v9, %v618_v19  ;;  %v639_v36 = vmul.f32 %v1621_v14, %v2128_v22  ;;  %v668_v42 = vmul.f32 %v1630_v21, %v2132_v24  ;;  %v1596_v63 = vld [vmem:[%s2017_s26 + $0x80] sm:$0xff]  ;;  %v1605_v0 = vld [vmem:[%s2017_s26 + $0xc8] sm:$0xff]  ;;  %v1614_v5 = vld [vmem:[%s2017_s26 + $0x110] sm:$0xff] }
  0x52   : > { %v705_v40 = vadd.f32 %v696_v11, %v647_v26  ;;  %v590_v41 = vadd.f32 %v581_v31, %v541_v27  ;;  %v697_v43 = vmul.f32 %v1639_v23, %v2138_v28  ;;  %v619_v48 = vadd.f32 %v610_v35, %v561_v29  ;;  %v1623_v6 = vld [vmem:[%s2017_s26 + $0x158] sm:$0xff]  ;;  %v1632_v13 = vld [vmem:[%s2017_s26 + $0x1a0] sm:$0xff]  ;;  %v1641_v14 = vld [vmem:[%s2017_s26 + $0x1e8] sm:$0xff] }
  0x53   : > { %v760_v46 = vadd.f32 %v751_v33, %v742_v25  ;;  %v734_v47 = vadd.f32 %v725_v20, %v676_v34  ;;  %v726_v49 = vmul.f32 %v1648_v32, %v2142_v30  ;;  %v542_v54 = vmul.f32 %v2108_v10, %v532_v37  ;;  %v744_v15 = vld [vmem:[%s3026_s9 + $0x28] sm:$0xff]  ;;  %v1650_v23 = vld [vmem:[%s2017_s26 + $0x230] sm:$0xff]  ;;  %v534_v31 = vld [vmem:[%s2017_s26 + $0x40] sm:$0x1] }
  0x54   : > { %v648_v53 = vadd.f32 %v639_v36, %v590_v41  ;;  %v562_v55 = vmul.f32 %v1595_v38, %v2112_v12  ;;  %v582_v56 = vmul.f32 %v1604_v39, %v2118_v16  ;;  %v677_v59 = vadd.f32 %v668_v42, %v619_v48  ;;  %v1597_v32 = vld [vmem:[%s2017_s26 + $0x88] sm:$0x1]  ;;  %v1606_v33 = vld [vmem:[%s2017_s26 + $0xd0] sm:$0x1]  ;;  %v1615_v38 = vld [vmem:[%s2017_s26 + $0x118] sm:$0x1] }
  0x55   : > { %770 = vst.msk [vmem:[%s3026_s9 + $0x18] sm:$0xff] %vm766_vm2, %v760_v46  ;;  %v752_v58 = vadd.f32 %v734_v47, %v705_v40  ;;  %v611_v60 = vmul.f32 %v1613_v44, %v2122_v18  ;;  %v640_v61 = vmul.f32 %v1622_v45, %v2128_v22  ;;  %v669_v3 = vmul.f32 %v1631_v50, %v2132_v24  ;;  %v1624_v39 = vld [vmem:[%s2017_s26 + $0x160] sm:$0x1]  ;;  %v1633_v44 = vld [vmem:[%s2017_s26 + $0x1a8] sm:$0x1]  ;;  %v745_v46 = vld [vmem:[%s3026_s9 + $0x30] sm:$0xff] }
  0x56   : > { %v706_v1 = vadd.f32 %v697_v43, %v648_v53  ;;  %v591_v2 = vadd.f32 %v582_v56, %v542_v54  ;;  %v698_v4 = vmul.f32 %v1640_v51, %v2138_v28  ;;  %v735_v8 = vadd.f32 %v726_v49, %v677_v59  ;;  %v1642_v45 = vld [vmem:[%s2017_s26 + $0x1f0] sm:$0x1]  ;;  %v1651_v51 = vld [vmem:[%s2017_s26 + $0x238] sm:$0x1] }
  0x57   : > { %v761_v7 = vadd.f32 %v752_v58, %v743_v52  ;;  %v620_v9 = vadd.f32 %v611_v60, %v562_v55  ;;  %v727_v11 = vmul.f32 %v1649_v57, %v2142_v30  ;;  %v543_v19 = vmul.f32 %v2108_v10, %v533_v62 }
  0x58   : > { %v649_v17 = vadd.f32 %v640_v61, %v591_v2  ;;  %v563_v20 = vmul.f32 %v1596_v63, %v2112_v12  ;;  %v583_v21 = vmul.f32 %v1605_v0, %v2118_v16  ;;  %v753_v25 = vadd.f32 %v735_v8, %v706_v1  ;;  %v746_v0 = vld [vmem:[%s3026_s9 + $0x38] sm:$0xff] }
  0x59   : > { %771 = vst.msk [vmem:[%s3026_s9 + $0x20] sm:$0xff] %vm766_vm2, %v761_v7  ;;  %v678_v26 = vadd.f32 %v669_v3, %v620_v9  ;;  %v612_v27 = vmul.f32 %v1614_v5, %v2122_v18  ;;  %v641_v29 = vmul.f32 %v1623_v6, %v2128_v22  ;;  %v670_v36 = vmul.f32 %v1632_v13, %v2132_v24  ;;  %v747_v7 = vld [vmem:[%s3026_s9 + $0x40] sm:$0x1]  ;;  %v781_v13 = vld [vmem:[%s3023_s6 + $0x8] sm:$0xff] (!%p3047_p2) }
  0x5a   : > { %v707_v34 = vadd.f32 %v698_v4, %v649_v17  ;;  %v592_v35 = vadd.f32 %v583_v21, %v543_v19  ;;  %v699_v37 = vmul.f32 %v1641_v14, %v2138_v28  ;;  %v762_v40 = vadd.f32 %v753_v25, %v744_v15  ;;  %v782_v14 = vld [vmem:[%s3023_s6 + $0x10] sm:$0xff] (!%p3047_p2)  ;;  %791 = vst.msk [vmem:[%s3027_s10 + $0x8] sm:$0xff] (!%p3047_p2), %vm789_vm4, %v781_v13  ;;  %v783_v15 = vld [vmem:[%s3023_s6 + $0x18] sm:$0xff] (!%p3047_p2)  ;;  %v784_v17 = vld [vmem:[%s3023_s6 + $0x20] sm:$0xff] (!%p3047_p2) }
  0x5b   : > { %v736_v41 = vadd.f32 %v727_v11, %v678_v26  ;;  %v621_v42 = vadd.f32 %v612_v27, %v563_v20  ;;  %v728_v43 = vmul.f32 %v1650_v23, %v2142_v30  ;;  %v544_v48 = vmul.f32 %v2108_v10, %v534_v31  ;;  %v780_v11 = vld [vmem:[%s3023_s6] sm:$0xff] (!%p3047_p2)  ;;  %792 = vst.msk [vmem:[%s3027_s10 + $0x10] sm:$0xff] (!%p3047_p2), %vm789_vm4, %v782_v14  ;;  %v785_v19 = vld [vmem:[%s3023_s6 + $0x28] sm:$0xff] (!%p3047_p2)  ;;  %v786_v20 = vld [vmem:[%s3023_s6 + $0x30] sm:$0xff] (!%p3047_p2) }
  0x5c   : > { %v650_v47 = vadd.f32 %v641_v29, %v592_v35  ;;  %v564_v49 = vmul.f32 %v1597_v32, %v2112_v12  ;;  %v584_v50 = vmul.f32 %v1606_v33, %v2118_v16  ;;  %772 = vst.msk [vmem:[%s3026_s9 + $0x28] sm:$0xff] %vm766_vm2, %v762_v40  ;;  %v613_v54 = vmul.f32 %v1615_v38, %v2122_v18  ;;  %v787_v21 = vld [vmem:[%s3023_s6 + $0x38] sm:$0xff] (!%p3047_p2)  ;;  %v788_v23 = vld [vmem:[%s3023_s6 + $0x40] sm:$0x1] (!%p3047_p2) }
  0x5d   : > { %v754_v52 = vadd.f32 %v736_v41, %v707_v34  ;;  %v679_v53 = vadd.f32 %v670_v36, %v621_v42  ;;  %v642_v55 = vmul.f32 %v1624_v39, %v2128_v22  ;;  %v671_v58 = vmul.f32 %v1633_v44, %v2132_v24  ;;  %790 = vst.msk [vmem:[%s3027_s10] sm:$0xff] (!%p3047_p2), %vm789_vm4, %v780_v11 }
  0x5e   : > { %v708_v56 = vadd.f32 %v699_v37, %v650_v47  ;;  %v593_v57 = vadd.f32 %v584_v50, %v544_v48  ;;  %v700_v59 = vmul.f32 %v1642_v45, %v2138_v28  ;;  %v622_v62 = vadd.f32 %v613_v54, %v564_v49  ;;  %793 = vst.msk [vmem:[%s3027_s10 + $0x18] sm:$0xff] (!%p3047_p2), %vm789_vm4, %v783_v15 }
  0x5f   : > { %v763_v60 = vadd.f32 %v754_v52, %v745_v46  ;;  %v737_v61 = vadd.f32 %v728_v43, %v679_v53  ;;  %v729_v63 = vmul.f32 %v1651_v51, %v2142_v30  ;;  %vm798_vm5 = vcmask (!%p3047_p2), 253952   ;;  %794 = vst.msk [vmem:[%s3027_s10 + $0x20] sm:$0xff] (!%p3047_p2), %vm789_vm4, %v784_v17  ;;  %795 = vst.msk [vmem:[%s3027_s10 + $0x28] sm:$0xff] (!%p3047_p2), %vm789_vm4, %v785_v19 }
  0x60   : > { %v651_v1 = vadd.f32 %v642_v55, %v593_v57  ;;  %v680_v3 = vadd.f32 %v671_v58, %v622_v62  ;;  %796 = vst.msk [vmem:[%s3027_s10 + $0x30] sm:$0xff] (!%p3047_p2), %vm789_vm4, %v786_v20  ;;  %797 = vst.msk [vmem:[%s3027_s10 + $0x38] sm:$0xff] (!%p3047_p2), %vm789_vm4, %v787_v21 }
  0x61   : > { %773 = vst.msk [vmem:[%s3026_s9 + $0x30] sm:$0xff] %vm766_vm2, %v763_v60  ;;  %v755_v2 = vadd.f32 %v737_v61, %v708_v56 }
  0x62   : > { %v709_v4 = vadd.f32 %v700_v59, %v651_v1  ;;  %v738_v6 = vadd.f32 %v729_v63, %v680_v3  ;;  %779 = sbr.rel (%p3047_p2) target bundleno = 105 (0x69), region = 68  ;;  %799 = vst.msk [vmem:[%s3027_s10 + $0x40] sm:$0x1] (!%p3047_p2), %vm798_vm5, %v788_v23 }
  0x63   : > { %v764_v5 = vadd.f32 %v755_v2, %v746_v0 }
  0x64   : > { %v756_v8 = vadd.f32 %v738_v6, %v709_v4 }
  0x65   : > { %774 = vst.msk [vmem:[%s3026_s9 + $0x38] sm:$0xff] %vm766_vm2, %v764_v5 }
  0x66   : > { %v765_v9 = vadd.f32 %v756_v8, %v747_v7 }
  0x68   : > { %776 = vst.msk [vmem:[%s3026_s9 + $0x40] sm:$0x1] %vm775_vm3, %v765_v9 }
  0x69 PF: > { %v800_v25 = vld [vmem:[%s2022_s0] sm:$0xff]  ;;  %v1653_v26 = vld [vmem:[%s2022_s0 + $0x48] sm:$0xff]  ;;  %v1662_v27 = vld [vmem:[%s2022_s0 + $0x90] sm:$0xff]  ;;  %vm1032_vm6 = vcmask 261120   ;;  %vm1041_vm7 = vcmask 253952   ;;  %p3048_p3 = scmp.ne.s32.totalorder %s1982_s22, 0 }
  0x6a   : > { %v809_v29 = vmul.f32 %v800_v25, %v2108_v10  ;;  %v828_v31 = vmul.f32 %v1653_v26, %v2112_v12  ;;  %v847_v32 = vmul.f32 %v1662_v27, %v2118_v16  ;;  %v1671_v33 = vld [vmem:[%s2022_s0 + $0xd8] sm:$0xff]  ;;  %v1680_v34 = vld [vmem:[%s2022_s0 + $0x120] sm:$0xff]  ;;  %v1689_v35 = vld [vmem:[%s2022_s0 + $0x168] sm:$0xff] }
  0x6b   : > { %v875_v36 = vmul.f32 %v1671_v33, %v2122_v18  ;;  %v903_v37 = vmul.f32 %v1680_v34, %v2128_v22  ;;  %v931_v38 = vmul.f32 %v1689_v35, %v2132_v24  ;;  %v1698_v39 = vld [vmem:[%s2022_s0 + $0x1b0] sm:$0xff]  ;;  %v1707_v40 = vld [vmem:[%s2022_s0 + $0x1f8] sm:$0xff]  ;;  %v801_v44 = vld [vmem:[%s2022_s0 + $0x8] sm:$0xff] }
  0x6c   : > { %v856_v41 = vadd.f32 %v847_v32, %v809_v29  ;;  %v959_v42 = vmul.f32 %v1698_v39, %v2138_v28  ;;  %v987_v43 = vmul.f32 %v1707_v40, %v2142_v30  ;;  %v1654_v45 = vld [vmem:[%s2022_s0 + $0x50] sm:$0xff]  ;;  %v1663_v46 = vld [vmem:[%s2022_s0 + $0x98] sm:$0xff]  ;;  %v810_v48 = vmul.f32 %v801_v44, %v2108_v10  ;;  %v1672_v51 = vld [vmem:[%s2022_s0 + $0xe0] sm:$0xff] }
  0x6d   : > { %v884_v47 = vadd.f32 %v875_v36, %v828_v31  ;;  %v829_v49 = vmul.f32 %v1654_v45, %v2112_v12  ;;  %v848_v50 = vmul.f32 %v1663_v46, %v2118_v16  ;;  %v1681_v52 = vld [vmem:[%s2022_s0 + $0x128] sm:$0xff]  ;;  %v1690_v53 = vld [vmem:[%s2022_s0 + $0x170] sm:$0xff]  ;;  %v876_v55 = vmul.f32 %v1672_v51, %v2122_v18  ;;  %v1699_v58 = vld [vmem:[%s2022_s0 + $0x1b8] sm:$0xff] }
  0x6e   : > { %v912_v54 = vadd.f32 %v903_v37, %v856_v41  ;;  %v904_v56 = vmul.f32 %v1681_v52, %v2128_v22  ;;  %v932_v57 = vmul.f32 %v1690_v53, %v2132_v24  ;;  %v1708_v59 = vld [vmem:[%s2022_s0 + $0x200] sm:$0xff]  ;;  %v960_v62 = vmul.f32 %v1699_v58, %v2138_v28  ;;  %v802_v0 = vld [vmem:[%s2022_s0 + $0x10] sm:$0xff]  ;;  %v1655_v1 = vld [vmem:[%s2022_s0 + $0x58] sm:$0xff] }
  0x6f   : > { %v940_v60 = vadd.f32 %v931_v38, %v884_v47  ;;  %v857_v61 = vadd.f32 %v848_v50, %v810_v48  ;;  %v988_v63 = vmul.f32 %v1708_v59, %v2142_v30  ;;  %v1664_v2 = vld [vmem:[%s2022_s0 + $0xa0] sm:$0xff]  ;;  %v885_v4 = vadd.f32 %v876_v55, %v829_v49  ;;  %v1673_v7 = vld [vmem:[%s2022_s0 + $0xe8] sm:$0xff]  ;;  %v1682_v8 = vld [vmem:[%s2022_s0 + $0x130] sm:$0xff] }
  0x70   : > { %v968_v3 = vadd.f32 %v959_v42, %v912_v54  ;;  %v811_v5 = vmul.f32 %v802_v0, %v2108_v10  ;;  %v830_v6 = vmul.f32 %v1655_v1, %v2112_v12  ;;  %v1691_v9 = vld [vmem:[%s2022_s0 + $0x178] sm:$0xff]  ;;  %v1005_v13 = vld [vmem:[%s3027_s10] sm:$0xff]  ;;  %v849_v15 = vmul.f32 %v1664_v2, %v2118_v16  ;;  %v1709_v20 = vld [vmem:[%s2022_s0 + $0x208] sm:$0xff] }
  0x71   : > { %v996_v11 = vadd.f32 %v987_v43, %v940_v60  ;;  %v913_v14 = vadd.f32 %v904_v56, %v857_v61  ;;  %v877_v17 = vmul.f32 %v1673_v7, %v2122_v18  ;;  %v1700_v19 = vld [vmem:[%s2022_s0 + $0x1c0] sm:$0xff]  ;;  %v941_v21 = vadd.f32 %v932_v57, %v885_v4  ;;  %v803_v27 = vld [vmem:[%s2022_s0 + $0x18] sm:$0xff]  ;;  %v1665_v31 = vld [vmem:[%s2022_s0 + $0xa8] sm:$0xff] }
  0x72   : > { %v905_v23 = vmul.f32 %v1682_v8, %v2128_v22  ;;  %v933_v25 = vmul.f32 %v1691_v9, %v2132_v24  ;;  %v961_v26 = vmul.f32 %v1700_v19, %v2138_v28  ;;  %v1656_v29 = vld [vmem:[%s2022_s0 + $0x60] sm:$0xff]  ;;  %v858_v34 = vadd.f32 %v849_v15, %v811_v5  ;;  %v1674_v36 = vld [vmem:[%s2022_s0 + $0xf0] sm:$0xff]  ;;  %v1683_v37 = vld [vmem:[%s2022_s0 + $0x138] sm:$0xff] }
  0x73   : > { %v1014_v32 = vadd.f32 %v996_v11, %v968_v3  ;;  %v969_v33 = vadd.f32 %v960_v62, %v913_v14  ;;  %v886_v35 = vadd.f32 %v877_v17, %v830_v6  ;;  %v1692_v38 = vld [vmem:[%s2022_s0 + $0x180] sm:$0xff]  ;;  %v997_v39 = vadd.f32 %v988_v63, %v941_v21  ;;  %v1701_v43 = vld [vmem:[%s2022_s0 + $0x1c8] sm:$0xff]  ;;  %v1710_v49 = vld [vmem:[%s2022_s0 + $0x210] sm:$0xff] }
  0x74   : > { %v989_v40 = vmul.f32 %v1709_v20, %v2142_v30  ;;  %v812_v41 = vmul.f32 %v803_v27, %v2108_v10  ;;  %v831_v42 = vmul.f32 %v1656_v29, %v2112_v12  ;;  %v1006_v45 = vld [vmem:[%s3027_s10 + $0x8] sm:$0xff]  ;;  %v914_v46 = vadd.f32 %v905_v23, %v858_v34  ;;  %v804_v50 = vld [vmem:[%s2022_s0 + $0x20] sm:$0xff]  ;;  %v1666_v56 = vld [vmem:[%s2022_s0 + $0xb0] sm:$0xff] }
  0x75   : > { %v1023_v44 = vadd.f32 %v1014_v32, %v1005_v13  ;;  %v942_v47 = vadd.f32 %v933_v25, %v886_v35  ;;  %v850_v48 = vmul.f32 %v1665_v31, %v2118_v16  ;;  %v1015_v51 = vadd.f32 %v997_v39, %v969_v33  ;;  %v1657_v55 = vld [vmem:[%s2022_s0 + $0x68] sm:$0xff]  ;;  %v1675_v61 = vld [vmem:[%s2022_s0 + $0xf8] sm:$0xff]  ;;  %v1684_v62 = vld [vmem:[%s2022_s0 + $0x140] sm:$0xff] }
  0x76   : > { %v878_v52 = vmul.f32 %v1674_v36, %v2122_v18  ;;  %v906_v53 = vmul.f32 %v1683_v37, %v2128_v22  ;;  %v934_v54 = vmul.f32 %v1692_v38, %v2132_v24  ;;  %v970_v57 = vadd.f32 %v961_v26, %v914_v46  ;;  %v1693_v63 = vld [vmem:[%s2022_s0 + $0x188] sm:$0xff]  ;;  %v1007_v1 = vld [vmem:[%s3027_s10 + $0x10] sm:$0xff]  ;;  %v1711_v11 = vld [vmem:[%s2022_s0 + $0x218] sm:$0xff] }
  0x77   : > { %1033 = vst.msk [vmem:[%s3027_s10] sm:$0xff] %vm1032_vm6, %v1023_v44  ;;  %v998_v58 = vadd.f32 %v989_v40, %v942_v47  ;;  %v859_v59 = vadd.f32 %v850_v48, %v812_v41  ;;  %v962_v60 = vmul.f32 %v1701_v43, %v2138_v28  ;;  %v1024_v0 = vadd.f32 %v1015_v51, %v1006_v45  ;;  %v1702_v5 = vld [vmem:[%s2022_s0 + $0x1d0] sm:$0xff]  ;;  %v805_v13 = vld [vmem:[%s2022_s0 + $0x28] sm:$0xff]  ;;  %v1667_v21 = vld [vmem:[%s2022_s0 + $0xb8] sm:$0xff] }
  0x78   : > { %v887_v2 = vadd.f32 %v878_v52, %v831_v42  ;;  %v990_v3 = vmul.f32 %v1710_v49, %v2142_v30  ;;  %v813_v4 = vmul.f32 %v804_v50, %v2108_v10  ;;  %v832_v8 = vmul.f32 %v1657_v55, %v2112_v12  ;;  %v1658_v20 = vld [vmem:[%s2022_s0 + $0x70] sm:$0xff]  ;;  %v1676_v23 = vld [vmem:[%s2022_s0 + $0x100] sm:$0xff]  ;;  %v1685_v31 = vld [vmem:[%s2022_s0 + $0x148] sm:$0xff] }
  0x79   : > { %v1016_v6 = vadd.f32 %v998_v58, %v970_v57  ;;  %v915_v7 = vadd.f32 %v906_v53, %v859_v59  ;;  %v851_v9 = vmul.f32 %v1666_v56, %v2118_v16  ;;  %1034 = vst.msk [vmem:[%s3027_s10 + $0x8] sm:$0xff] %vm1032_vm6, %v1024_v0  ;;  %v879_v15 = vmul.f32 %v1675_v61, %v2122_v18  ;;  %v1694_v32 = vld [vmem:[%s2022_s0 + $0x190] sm:$0xff]  ;;  %v1703_v37 = vld [vmem:[%s2022_s0 + $0x1d8] sm:$0xff]  ;;  %v1712_v43 = vld [vmem:[%s2022_s0 + $0x220] sm:$0xff] }
  0x7a   : > { %v943_v14 = vadd.f32 %v934_v54, %v887_v2  ;;  %v907_v17 = vmul.f32 %v1684_v62, %v2128_v22  ;;  %v935_v19 = vmul.f32 %v1693_v63, %v2132_v24  ;;  %v963_v29 = vmul.f32 %v1702_v5, %v2138_v28  ;;  %v1008_v38 = vld [vmem:[%s3027_s10 + $0x18] sm:$0xff]  ;;  %v806_v44 = vld [vmem:[%s2022_s0 + $0x30] sm:$0xff]  ;;  %v1668_v50 = vld [vmem:[%s2022_s0 + $0xc0] sm:$0xff] }
  0x7b   : > { %v1025_v25 = vadd.f32 %v1016_v6, %v1007_v1  ;;  %v971_v26 = vadd.f32 %v962_v60, %v915_v7  ;;  %v860_v27 = vadd.f32 %v851_v9, %v813_v4  ;;  %v888_v34 = vadd.f32 %v879_v15, %v832_v8  ;;  %v1659_v49 = vld [vmem:[%s2022_s0 + $0x78] sm:$0xff]  ;;  %v1677_v55 = vld [vmem:[%s2022_s0 + $0x108] sm:$0xff]  ;;  %v1686_v56 = vld [vmem:[%s2022_s0 + $0x150] sm:$0xff] }
  0x7c   : > { %v999_v33 = vadd.f32 %v990_v3, %v943_v14  ;;  %v991_v35 = vmul.f32 %v1711_v11, %v2142_v30  ;;  %v814_v36 = vmul.f32 %v805_v13, %v2108_v10  ;;  %v833_v40 = vmul.f32 %v1658_v20, %v2112_v12  ;;  %v1695_v57 = vld [vmem:[%s2022_s0 + $0x198] sm:$0xff]  ;;  %v1704_v62 = vld [vmem:[%s2022_s0 + $0x1e0] sm:$0xff]  ;;  %v1713_v4 = vld [vmem:[%s2022_s0 + $0x228] sm:$0xff] }
  0x7d   : > { %1035 = vst.msk [vmem:[%s3027_s10 + $0x10] sm:$0xff] %vm1032_vm6, %v1025_v25  ;;  %v916_v39 = vadd.f32 %v907_v17, %v860_v27  ;;  %v852_v41 = vmul.f32 %v1667_v21, %v2118_v16  ;;  %v880_v42 = vmul.f32 %v1676_v23, %v2122_v18  ;;  %v944_v46 = vadd.f32 %v935_v19, %v888_v34  ;;  %v1009_v63 = vld [vmem:[%s3027_s10 + $0x20] sm:$0xff]  ;;  %v807_v5 = vld [vmem:[%s2022_s0 + $0x38] sm:$0xff]  ;;  %v1669_v13 = vld [vmem:[%s2022_s0 + $0xc8] sm:$0xff] }
  0x7e   : > { %v1017_v45 = vadd.f32 %v999_v33, %v971_v26  ;;  %v908_v47 = vmul.f32 %v1685_v31, %v2128_v22  ;;  %v936_v48 = vmul.f32 %v1694_v32, %v2132_v24  ;;  %v964_v54 = vmul.f32 %v1703_v37, %v2138_v28  ;;  %v1660_v11 = vld [vmem:[%s2022_s0 + $0x80] sm:$0xff]  ;;  %v1678_v20 = vld [vmem:[%s2022_s0 + $0x110] sm:$0xff]  ;;  %v1687_v21 = vld [vmem:[%s2022_s0 + $0x158] sm:$0xff] }
  0x7f   : > { %v972_v51 = vadd.f32 %v963_v29, %v916_v39  ;;  %v861_v52 = vadd.f32 %v852_v41, %v814_v36  ;;  %v889_v53 = vadd.f32 %v880_v42, %v833_v40  ;;  %v1000_v59 = vadd.f32 %v991_v35, %v944_v46  ;;  %v1696_v23 = vld [vmem:[%s2022_s0 + $0x1a0] sm:$0xff]  ;;  %v1010_v26 = vld [vmem:[%s3027_s10 + $0x28] sm:$0xff]  ;;  %v1714_v37 = vld [vmem:[%s2022_s0 + $0x230] sm:$0xff] }
  0x80   : > { %v1026_v58 = vadd.f32 %v1017_v45, %v1008_v38  ;;  %v992_v60 = vmul.f32 %v1712_v43, %v2142_v30  ;;  %v815_v61 = vmul.f32 %v806_v44, %v2108_v10  ;;  %v834_v2 = vmul.f32 %v1659_v49, %v2112_v12  ;;  %v1705_v32 = vld [vmem:[%s2022_s0 + $0x1e8] sm:$0xff]  ;;  %v808_v38 = vld [vmem:[%s2022_s0 + $0x40] sm:$0x1]  ;;  %v1670_v44 = vld [vmem:[%s2022_s0 + $0xd0] sm:$0x1] }
  0x81   : > { %v917_v0 = vadd.f32 %v908_v47, %v861_v52  ;;  %v945_v1 = vadd.f32 %v936_v48, %v889_v53  ;;  %v853_v3 = vmul.f32 %v1668_v50, %v2118_v16  ;;  %v1018_v6 = vadd.f32 %v1000_v59, %v972_v51  ;;  %v1661_v43 = vld [vmem:[%s2022_s0 + $0x88] sm:$0x1]  ;;  %v1679_v45 = vld [vmem:[%s2022_s0 + $0x118] sm:$0x1]  ;;  %v1688_v50 = vld [vmem:[%s2022_s0 + $0x160] sm:$0x1] }
  0x82   : > { %1036 = vst.msk [vmem:[%s3027_s10 + $0x18] sm:$0xff] %vm1032_vm6, %v1026_v58  ;;  %v881_v7 = vmul.f32 %v1677_v55, %v2122_v18  ;;  %v909_v8 = vmul.f32 %v1686_v56, %v2128_v22  ;;  %v937_v9 = vmul.f32 %v1695_v57, %v2132_v24  ;;  %v965_v19 = vmul.f32 %v1704_v62, %v2138_v28  ;;  %v1697_v51 = vld [vmem:[%s2022_s0 + $0x1a8] sm:$0x1]  ;;  %v1706_v56 = vld [vmem:[%s2022_s0 + $0x1f0] sm:$0x1] }
  0x83   : > { %v973_v14 = vadd.f32 %v964_v54, %v917_v0  ;;  %v1001_v15 = vadd.f32 %v992_v60, %v945_v1  ;;  %v862_v17 = vadd.f32 %v853_v3, %v815_v61  ;;  %v1027_v25 = vadd.f32 %v1018_v6, %v1009_v63  ;;  %v1011_v57 = vld [vmem:[%s3027_s10 + $0x30] sm:$0xff]  ;;  %v1715_v62 = vld [vmem:[%s2022_s0 + $0x238] sm:$0x1] }
  0x84   : > { %v890_v27 = vadd.f32 %v881_v7, %v834_v2  ;;  %v993_v29 = vmul.f32 %v1713_v4, %v2142_v30  ;;  %v816_v31 = vmul.f32 %v807_v5, %v2108_v10  ;;  %v835_v35 = vmul.f32 %v1660_v11, %v2112_v12  ;;  %v1012_v11 = vld [vmem:[%s3027_s10 + $0x38] sm:$0xff] }
  0x85   : > { %v1019_v33 = vadd.f32 %v1001_v15, %v973_v14  ;;  %v918_v34 = vadd.f32 %v909_v8, %v862_v17  ;;  %v854_v36 = vmul.f32 %v1669_v13, %v2118_v16  ;;  %1037 = vst.msk [vmem:[%s3027_s10 + $0x20] sm:$0xff] %vm1032_vm6, %v1027_v25  ;;  %v882_v40 = vmul.f32 %v1678_v20, %v2122_v18 }
  0x86   : > { %v946_v39 = vadd.f32 %v937_v9, %v890_v27  ;;  %v910_v41 = vmul.f32 %v1687_v21, %v2128_v22  ;;  %v938_v42 = vmul.f32 %v1696_v23, %v2132_v24  ;;  %v966_v49 = vmul.f32 %v1705_v32, %v2138_v28  ;;  %v1013_v21 = vld [vmem:[%s3027_s10 + $0x40] sm:$0x1]  ;;  %v1047_v27 = vld [vmem:[%s3024_s7 + $0x8] sm:$0xff] (!%p3048_p3) }
  0x87   : > { %v1028_v46 = vadd.f32 %v1019_v33, %v1010_v26  ;;  %v974_v47 = vadd.f32 %v965_v19, %v918_v34  ;;  %v863_v48 = vadd.f32 %v854_v36, %v816_v31  ;;  %v891_v53 = vadd.f32 %v882_v40, %v835_v35  ;;  %v1046_v26 = vld [vmem:[%s3024_s7] sm:$0xff] (!%p3048_p3)  ;;  %1052 = vst.msk [vmem:[#allocation5 + $0x8] sm:$0xff] (!%p3048_p3), %vm766_vm2, %v1047_v27  ;;  %v1049_v31 = vld [vmem:[%s3024_s7 + $0x18] sm:$0xff] (!%p3048_p3) }
  0x88   : > { %v1002_v52 = vadd.f32 %v993_v29, %v946_v39  ;;  %v994_v54 = vmul.f32 %v1714_v37, %v2142_v30  ;;  %v817_v55 = vmul.f32 %v808_v38, %v2108_v10  ;;  %v836_v59 = vmul.f32 %v1661_v43, %v2112_v12  ;;  %v1048_v29 = vld [vmem:[%s3024_s7 + $0x10] sm:$0xff] (!%p3048_p3)  ;;  %1051 = vst.msk [vmem:[#allocation5] sm:$0xff] (!%p3048_p3), %vm766_vm2, %v1046_v26  ;;  %v1050_v32 = vld [vmem:[%s3024_s7 + $0x20] sm:$0x1] (!%p3048_p3) }
  0x89   : > { %1038 = vst.msk [vmem:[%s3027_s10 + $0x28] sm:$0xff] %vm1032_vm6, %v1028_v46  ;;  %v919_v58 = vadd.f32 %v910_v41, %v863_v48  ;;  %v855_v60 = vmul.f32 %v1670_v44, %v2118_v16  ;;  %v883_v61 = vmul.f32 %v1679_v45, %v2122_v18  ;;  %v947_v0 = vadd.f32 %v938_v42, %v891_v53 }
  0x8a   : > { %v1020_v63 = vadd.f32 %v1002_v52, %v974_v47  ;;  %v911_v1 = vmul.f32 %v1688_v50, %v2128_v22  ;;  %v939_v2 = vmul.f32 %v1697_v51, %v2132_v24  ;;  %v967_v6 = vmul.f32 %v1706_v56, %v2138_v28  ;;  %1053 = vst.msk [vmem:[#allocation5 + $0x10] sm:$0xff] (!%p3048_p3), %vm766_vm2, %v1048_v29 }
  0x8b   : > { %v975_v3 = vadd.f32 %v966_v49, %v919_v58  ;;  %v864_v4 = vadd.f32 %v855_v60, %v817_v55  ;;  %v892_v5 = vadd.f32 %v883_v61, %v836_v59  ;;  %v1003_v8 = vadd.f32 %v994_v54, %v947_v0  ;;  %1054 = vst.msk [vmem:[#allocation5 + $0x18] sm:$0xff] (!%p3048_p3), %vm766_vm2, %v1049_v31 }
  0x8c   : > { %v1029_v7 = vadd.f32 %v1020_v63, %v1011_v57  ;;  %v995_v9 = vmul.f32 %v1715_v62, %v2142_v30  ;;  %1055 = vst.msk [vmem:[#allocation5 + $0x20] sm:$0x1] (!%p3048_p3), %vm775_vm3, %v1050_v32 }
  0x8d   : > { %v920_v13 = vadd.f32 %v911_v1, %v864_v4  ;;  %v948_v14 = vadd.f32 %v939_v2, %v892_v5  ;;  %v1021_v15 = vadd.f32 %v1003_v8, %v975_v3 }
  0x8e   : > { %1039 = vst.msk [vmem:[%s3027_s10 + $0x30] sm:$0xff] %vm1032_vm6, %v1029_v7 }
  0x8f   : > { %v976_v17 = vadd.f32 %v967_v6, %v920_v13  ;;  %v1004_v19 = vadd.f32 %v995_v9, %v948_v14  ;;  %v1030_v20 = vadd.f32 %v1021_v15, %v1012_v11  ;;  %1045 = sbr.rel (%p3048_p3) target bundleno = 150 (0x96), region = 72 }
  0x91   : > { %v1022_v23 = vadd.f32 %v1004_v19, %v976_v17  ;;  %1040 = vst.msk [vmem:[%s3027_s10 + $0x38] sm:$0xff] %vm1032_vm6, %v1030_v20 }
  0x93   : > { %v1031_v25 = vadd.f32 %v1022_v23, %v1013_v21 }
  0x95   : > { %1042 = vst.msk [vmem:[%s3027_s10 + $0x40] sm:$0x1] %vm1041_vm7, %v1031_v25 }
  0x96 PF: > { %v1056_v33 = vld [vmem:[%s2027_s14] sm:$0xff]  ;;  %v1717_v34 = vld [vmem:[%s2027_s14 + $0x28] sm:$0xff]  ;;  %v1722_v35 = vld [vmem:[%s2027_s14 + $0x50] sm:$0xff]  ;;  %p3049_p4 = scmp.ne.s32.totalorder %s1982_s22, 0 }
  0x97   : > { %v1061_v36 = vmul.f32 %v1056_v33, %v2108_v10  ;;  %v1072_v37 = vmul.f32 %v1717_v34, %v2112_v12  ;;  %v1083_v38 = vmul.f32 %v1722_v35, %v2118_v16  ;;  %v1727_v39 = vld [vmem:[%s2027_s14 + $0x78] sm:$0xff]  ;;  %v1732_v40 = vld [vmem:[%s2027_s14 + $0xa0] sm:$0xff]  ;;  %v1737_v41 = vld [vmem:[%s2027_s14 + $0xc8] sm:$0xff]  ;;  %s3050_s11 = sld [smem:[#allocation12_spill]] (!%p3049_p4)  ;;  %vm1205_vm8 = vcmask (!%p3049_p4), 130048   ;;  %s3051_s24 = sld [smem:[#allocation14_spill]] (!%p3049_p4) }
  0x98   : > { %v1099_v42 = vmul.f32 %v1727_v39, %v2122_v18  ;;  %v1115_v43 = vmul.f32 %v1732_v40, %v2128_v22  ;;  %v1131_v44 = vmul.f32 %v1737_v41, %v2132_v24  ;;  %v1742_v45 = vld [vmem:[%s2027_s14 + $0xf0] sm:$0xff]  ;;  %v1747_v46 = vld [vmem:[%s2027_s14 + $0x118] sm:$0xff]  ;;  %v1057_v50 = vld [vmem:[%s2027_s14 + $0x8] sm:$0xff]  ;;  %vm1214_vm9 = vcmask (!%p3049_p4), 122880  }
  0x99   : > { %v1088_v47 = vadd.f32 %v1083_v38, %v1061_v36  ;;  %v1147_v48 = vmul.f32 %v1742_v45, %v2138_v28  ;;  %v1163_v49 = vmul.f32 %v1747_v46, %v2142_v30  ;;  %v1718_v51 = vld [vmem:[%s2027_s14 + $0x30] sm:$0xff]  ;;  %v1723_v52 = vld [vmem:[%s2027_s14 + $0x58] sm:$0xff]  ;;  %v1062_v54 = vmul.f32 %v1057_v50, %v2108_v10  ;;  %v1728_v57 = vld [vmem:[%s2027_s14 + $0x80] sm:$0xff] }
  0x9a   : > { %v1104_v53 = vadd.f32 %v1099_v42, %v1072_v37  ;;  %v1073_v55 = vmul.f32 %v1718_v51, %v2112_v12  ;;  %v1084_v56 = vmul.f32 %v1723_v52, %v2118_v16  ;;  %v1733_v58 = vld [vmem:[%s2027_s14 + $0xa8] sm:$0xff]  ;;  %v1738_v59 = vld [vmem:[%s2027_s14 + $0xd0] sm:$0xff]  ;;  %v1100_v61 = vmul.f32 %v1728_v57, %v2122_v18  ;;  %v1743_v0 = vld [vmem:[%s2027_s14 + $0xf8] sm:$0xff] }
  0x9b   : > { %v1120_v60 = vadd.f32 %v1115_v43, %v1088_v47  ;;  %v1116_v62 = vmul.f32 %v1733_v58, %v2128_v22  ;;  %v1132_v63 = vmul.f32 %v1738_v59, %v2132_v24  ;;  %v1748_v1 = vld [vmem:[%s2027_s14 + $0x120] sm:$0xff]  ;;  %v1148_v4 = vmul.f32 %v1743_v0, %v2138_v28  ;;  %v1058_v6 = vld [vmem:[%s2027_s14 + $0x10] sm:$0xff]  ;;  %v1719_v7 = vld [vmem:[%s2027_s14 + $0x38] sm:$0xff] }
  0x9c   : > { %v1136_v2 = vadd.f32 %v1131_v44, %v1104_v53  ;;  %v1089_v3 = vadd.f32 %v1084_v56, %v1062_v54  ;;  %v1164_v5 = vmul.f32 %v1748_v1, %v2142_v30  ;;  %v1724_v8 = vld [vmem:[%s2027_s14 + $0x60] sm:$0xff]  ;;  %v1105_v11 = vadd.f32 %v1100_v61, %v1073_v55  ;;  %v1729_v15 = vld [vmem:[%s2027_s14 + $0x88] sm:$0xff]  ;;  %v1734_v17 = vld [vmem:[%s2027_s14 + $0xb0] sm:$0xff] }
  0x9d   : > { %v1152_v9 = vadd.f32 %v1147_v48, %v1120_v60  ;;  %v1063_v13 = vmul.f32 %v1058_v6, %v2108_v10  ;;  %v1074_v14 = vmul.f32 %v1719_v7, %v2112_v12  ;;  %v1739_v19 = vld [vmem:[%s2027_s14 + $0xd8] sm:$0xff]  ;;  %v1173_v21 = vld [vmem:[#allocation5] sm:$0xff]  ;;  %v1085_v25 = vmul.f32 %v1724_v8, %v2118_v16  ;;  %v1749_v29 = vld [vmem:[%s2027_s14 + $0x128] sm:$0xff] }
  0x9e   : > { %v1168_v20 = vadd.f32 %v1163_v49, %v1136_v2  ;;  %v1121_v23 = vadd.f32 %v1116_v62, %v1089_v3  ;;  %v1101_v26 = vmul.f32 %v1729_v15, %v2122_v18  ;;  %v1744_v27 = vld [vmem:[%s2027_s14 + $0x100] sm:$0xff]  ;;  %v1137_v31 = vadd.f32 %v1132_v63, %v1105_v11  ;;  %v1059_v35 = vld [vmem:[%s2027_s14 + $0x18] sm:$0xff]  ;;  %v1725_v37 = vld [vmem:[%s2027_s14 + $0x68] sm:$0xff] }
  0x9f   : > { %v1117_v32 = vmul.f32 %v1734_v17, %v2128_v22  ;;  %v1133_v33 = vmul.f32 %v1739_v19, %v2132_v24  ;;  %v1149_v34 = vmul.f32 %v1744_v27, %v2138_v28  ;;  %v1720_v36 = vld [vmem:[%s2027_s14 + $0x40] sm:$0xff]  ;;  %v1090_v40 = vadd.f32 %v1085_v25, %v1063_v13  ;;  %v1730_v42 = vld [vmem:[%s2027_s14 + $0x90] sm:$0xff]  ;;  %v1735_v43 = vld [vmem:[%s2027_s14 + $0xb8] sm:$0xff] }
  0xa0   : > { %v1178_v38 = vadd.f32 %v1168_v20, %v1152_v9  ;;  %v1153_v39 = vadd.f32 %v1148_v4, %v1121_v23  ;;  %v1106_v41 = vadd.f32 %v1101_v26, %v1074_v14  ;;  %v1740_v44 = vld [vmem:[%s2027_s14 + $0xe0] sm:$0xff]  ;;  %v1169_v45 = vadd.f32 %v1164_v5, %v1137_v31  ;;  %v1745_v49 = vld [vmem:[%s2027_s14 + $0x108] sm:$0xff]  ;;  %v1750_v55 = vld [vmem:[%s2027_s14 + $0x130] sm:$0xff] }
  0xa1   : > { %v1165_v46 = vmul.f32 %v1749_v29, %v2142_v30  ;;  %v1064_v47 = vmul.f32 %v1059_v35, %v2108_v10  ;;  %v1075_v48 = vmul.f32 %v1720_v36, %v2112_v12  ;;  %v1174_v51 = vld [vmem:[#allocation5 + $0x8] sm:$0xff]  ;;  %v1122_v52 = vadd.f32 %v1117_v32, %v1090_v40  ;;  %v1060_v56 = vld [vmem:[%s2027_s14 + $0x20] sm:$0x1]  ;;  %v1726_v62 = vld [vmem:[%s2027_s14 + $0x70] sm:$0x1] }
  0xa2   : > { %v1183_v50 = vadd.f32 %v1178_v38, %v1173_v21  ;;  %v1138_v53 = vadd.f32 %v1133_v33, %v1106_v41  ;;  %v1086_v54 = vmul.f32 %v1725_v37, %v2118_v16  ;;  %v1179_v57 = vadd.f32 %v1169_v45, %v1153_v39  ;;  %v1721_v61 = vld [vmem:[%s2027_s14 + $0x48] sm:$0x1]  ;;  %v1731_v3 = vld [vmem:[%s2027_s14 + $0x98] sm:$0x1]  ;;  %v1736_v4 = vld [vmem:[%s2027_s14 + $0xc0] sm:$0x1] }
  0xa3   : > { %v1102_v58 = vmul.f32 %v1730_v42, %v2122_v18  ;;  %v1118_v59 = vmul.f32 %v1735_v43, %v2128_v22  ;;  %v1134_v60 = vmul.f32 %v1740_v44, %v2132_v24  ;;  %v1154_v63 = vadd.f32 %v1149_v34, %v1122_v52  ;;  %v1741_v5 = vld [vmem:[%s2027_s14 + $0xe8] sm:$0x1]  ;;  %v1175_v7 = vld [vmem:[#allocation5 + $0x10] sm:$0xff]  ;;  %v1751_v20 = vld [vmem:[%s2027_s14 + $0x138] sm:$0x1] }
  0xa4   : > { %1188 = vst.msk [vmem:[#allocation5] sm:$0xff] %vm766_vm2, %v1183_v50  ;;  %v1170_v0 = vadd.f32 %v1165_v46, %v1138_v53  ;;  %v1091_v1 = vadd.f32 %v1086_v54, %v1064_v47  ;;  %v1150_v2 = vmul.f32 %v1745_v49, %v2138_v28  ;;  %v1184_v6 = vadd.f32 %v1179_v57, %v1174_v51  ;;  %v1746_v13 = vld [vmem:[%s2027_s14 + $0x110] sm:$0x1]  ;;  %v1176_v36 = vld [vmem:[#allocation5 + $0x18] sm:$0xff]  ;;  %v1177_v43 = vld [vmem:[#allocation5 + $0x20] sm:$0x1] }
  0xa5   : > { %v1107_v8 = vadd.f32 %v1102_v58, %v1075_v48  ;;  %v1166_v9 = vmul.f32 %v1750_v55, %v2142_v30  ;;  %v1065_v11 = vmul.f32 %v1060_v56, %v2108_v10  ;;  %v1076_v17 = vmul.f32 %v1721_v61, %v2112_v12  ;;  %v1196_v46 = vld [vmem:[%s3050_s11] sm:$0xff] (!%p3049_p4)  ;;  %v1197_v47 = vld [vmem:[%s3050_s11 + $0x8] sm:$0xff] (!%p3049_p4)  ;;  %v1198_v48 = vld [vmem:[%s3050_s11 + $0x10] sm:$0xff] (!%p3049_p4) }
  0xa6   : > { %v1180_v14 = vadd.f32 %v1170_v0, %v1154_v63  ;;  %v1123_v15 = vadd.f32 %v1118_v59, %v1091_v1  ;;  %v1087_v19 = vmul.f32 %v1726_v62, %v2118_v16  ;;  %1189 = vst.msk [vmem:[#allocation5 + $0x8] sm:$0xff] %vm766_vm2, %v1184_v6  ;;  %v1103_v23 = vmul.f32 %v1731_v3, %v2122_v18  ;;  %v1199_v49 = vld [vmem:[%s3050_s11 + $0x18] sm:$0xff] (!%p3049_p4)  ;;  %v1200_v50 = vld [vmem:[%s3050_s11 + $0x20] sm:$0xff] (!%p3049_p4)  ;;  %v1201_v51 = vld [vmem:[%s3050_s11 + $0x28] sm:$0xff] (!%p3049_p4) }
  0xa7   : > { %v1139_v21 = vadd.f32 %v1134_v60, %v1107_v8  ;;  %v1119_v25 = vmul.f32 %v1736_v4, %v2128_v22  ;;  %v1135_v26 = vmul.f32 %v1741_v5, %v2132_v24  ;;  %v1151_v32 = vmul.f32 %v1746_v13, %v2138_v28  ;;  %1206 = vst.msk [vmem:[%s3051_s24] sm:$0xff] (!%p3049_p4), %vm1205_vm8, %v1196_v46  ;;  %v1202_v52 = vld [vmem:[%s3050_s11 + $0x30] sm:$0xff] (!%p3049_p4)  ;;  %v1203_v53 = vld [vmem:[%s3050_s11 + $0x38] sm:$0xff] (!%p3049_p4)  ;;  %v1204_v54 = vld [vmem:[%s3050_s11 + $0x40] sm:$0x1] (!%p3049_p4) }
  0xa8   : > { %v1185_v27 = vadd.f32 %v1180_v14, %v1175_v7  ;;  %v1155_v29 = vadd.f32 %v1150_v2, %v1123_v15  ;;  %v1092_v31 = vadd.f32 %v1087_v19, %v1065_v11  ;;  %v1108_v34 = vadd.f32 %v1103_v23, %v1076_v17  ;;  %1207 = vst.msk [vmem:[%s3051_s24 + $0x8] sm:$0xff] (!%p3049_p4), %vm1205_vm8, %v1197_v47 }
  0xa9   : > { %v1171_v33 = vadd.f32 %v1166_v9, %v1139_v21  ;;  %v1167_v35 = vmul.f32 %v1751_v20, %v2142_v30  ;;  %1208 = vst.msk [vmem:[%s3051_s24 + $0x10] sm:$0xff] (!%p3049_p4), %vm1205_vm8, %v1198_v48  ;;  %1209 = vst.msk [vmem:[%s3051_s24 + $0x18] sm:$0xff] (!%p3049_p4), %vm1205_vm8, %v1199_v49 }
  0xaa   : > { %1190 = vst.msk [vmem:[#allocation5 + $0x10] sm:$0xff] %vm766_vm2, %v1185_v27  ;;  %v1124_v37 = vadd.f32 %v1119_v25, %v1092_v31  ;;  %v1140_v39 = vadd.f32 %v1135_v26, %v1108_v34 }
  0xab   : > { %v1181_v38 = vadd.f32 %v1171_v33, %v1155_v29  ;;  %1210 = vst.msk [vmem:[%s3051_s24 + $0x20] sm:$0xff] (!%p3049_p4), %vm1205_vm8, %v1200_v50  ;;  %1211 = vst.msk [vmem:[%s3051_s24 + $0x28] sm:$0xff] (!%p3049_p4), %vm1205_vm8, %v1201_v51 }
  0xac   : > { %v1156_v40 = vadd.f32 %v1151_v32, %v1124_v37  ;;  %v1172_v42 = vadd.f32 %v1167_v35, %v1140_v39  ;;  %1195 = sbr.rel (%p3049_p4) target bundleno = 179 (0xb3), region = 76  ;;  %1212 = vst.msk [vmem:[%s3051_s24 + $0x30] sm:$0xff] (!%p3049_p4), %vm1205_vm8, %v1202_v52  ;;  %1213 = vst.msk [vmem:[%s3051_s24 + $0x38] sm:$0xff] (!%p3049_p4), %vm1205_vm8, %v1203_v53 }
  0xad   : > { %v1186_v41 = vadd.f32 %v1181_v38, %v1176_v36  ;;  %1215 = vst.msk [vmem:[%s3051_s24 + $0x40] sm:$0x1] (!%p3049_p4), %vm1214_vm9, %v1204_v54 }
  0xae   : > { %v1182_v44 = vadd.f32 %v1172_v42, %v1156_v40 }
  0xaf   : > { %1191 = vst.msk [vmem:[#allocation5 + $0x18] sm:$0xff] %vm766_vm2, %v1186_v41 }
  0xb0   : > { %v1187_v45 = vadd.f32 %v1182_v44, %v1177_v43 }
  0xb2   : > { %1192 = vst.msk [vmem:[#allocation5 + $0x20] sm:$0x1] %vm775_vm3, %v1187_v45 }
  0xb3 PF: > { %v1216_v55 = vld [vmem:[%s2032_s15] sm:$0xff]  ;;  %v1753_v56 = vld [vmem:[%s2032_s15 + $0x48] sm:$0xff]  ;;  %v1762_v57 = vld [vmem:[%s2032_s15 + $0x90] sm:$0xff]  ;;  %vm1448_vm10 = vcmask 130048   ;;  %s3052_s19 = sld [smem:[#allocation14_spill]]  ;;  %s1908_s28 = smov [#allocation5]  }
  0xb4   : > { %v1225_v58 = vmul.f32 %v1216_v55, %v2108_v10  ;;  %v1244_v59 = vmul.f32 %v1753_v56, %v2112_v12  ;;  %v1263_v60 = vmul.f32 %v1762_v57, %v2118_v16  ;;  %v1771_v61 = vld [vmem:[%s2032_s15 + $0xd8] sm:$0xff]  ;;  %v1780_v62 = vld [vmem:[%s2032_s15 + $0x120] sm:$0xff]  ;;  %v1789_v63 = vld [vmem:[%s2032_s15 + $0x168] sm:$0xff]  ;;  %s1471_s12 = sshll.u32 %s1908_s28, 4  ;;  %p1836_p5 = scmp.eq.s32.totalorder %s1982_s22, 3  ;;  %s2914_s12 = int_to_ptr.vmem [resolvable:$true] %s1471_s12 }
  0xb5   : > { %v1291_v0 = vmul.f32 %v1771_v61, %v2122_v18  ;;  %v1319_v1 = vmul.f32 %v1780_v62, %v2128_v22  ;;  %v1347_v2 = vmul.f32 %v1789_v63, %v2132_v24  ;;  %v1798_v3 = vld [vmem:[%s2032_s15 + $0x1b0] sm:$0xff]  ;;  %v1807_v4 = vld [vmem:[%s2032_s15 + $0x1f8] sm:$0xff]  ;;  %v1217_v8 = vld [vmem:[%s2032_s15 + $0x8] sm:$0xff]  ;;  %s1865_s27 = scalar_lea.vmem %s2914_s12, 640  ;;  %p1872_p9 = scmp.lt.s32.totalorder %s2914_s12, %s2914_s12 }
  0xb6   : > { %v1272_v5 = vadd.f32 %v1263_v60, %v1225_v58  ;;  %v1375_v6 = vmul.f32 %v1798_v3, %v2138_v28  ;;  %v1403_v7 = vmul.f32 %v1807_v4, %v2142_v30  ;;  %v1754_v9 = vld [vmem:[%s2032_s15 + $0x50] sm:$0xff]  ;;  %v1763_v11 = vld [vmem:[%s2032_s15 + $0x98] sm:$0xff]  ;;  %v1226_v14 = vmul.f32 %v1217_v8, %v2108_v10  ;;  %v1772_v19 = vld [vmem:[%s2032_s15 + $0xe0] sm:$0xff]  ;;  %p1866_p6 = scmp.ne.s32.totalorder %s2914_s12, %s1865_s27  ;;  %p1873_p10 = scmp.lt.s32.totalorder %s1865_s27, %s1865_s27 }
  0xb7   : > { %v1300_v13 = vadd.f32 %v1291_v0, %v1244_v59  ;;  %v1245_v15 = vmul.f32 %v1754_v9, %v2112_v12  ;;  %v1264_v17 = vmul.f32 %v1763_v11, %v2118_v16  ;;  %v1781_v20 = vld [vmem:[%s2032_s15 + $0x128] sm:$0xff]  ;;  %v1790_v21 = vld [vmem:[%s2032_s15 + $0x170] sm:$0xff]  ;;  %v1292_v25 = vmul.f32 %v1772_v19, %v2122_v18  ;;  %v1799_v29 = vld [vmem:[%s2032_s15 + $0x1b8] sm:$0xff] }
  0xb8   : > { %v1328_v23 = vadd.f32 %v1319_v1, %v1272_v5  ;;  %v1320_v26 = vmul.f32 %v1781_v20, %v2128_v22  ;;  %v1348_v27 = vmul.f32 %v1790_v21, %v2132_v24  ;;  %v1808_v31 = vld [vmem:[%s2032_s15 + $0x200] sm:$0xff]  ;;  %v1376_v34 = vmul.f32 %v1799_v29, %v2138_v28  ;;  %v1218_v36 = vld [vmem:[%s2032_s15 + $0x10] sm:$0xff]  ;;  %v1755_v37 = vld [vmem:[%s2032_s15 + $0x58] sm:$0xff]  ;;  %p1867_p7 = pnand %p1866_p6, %p1836_p5  ;;  %p1874_p11 = por %p1873_p10, %p1872_p9 }
  0xb9   : > { %v1356_v32 = vadd.f32 %v1347_v2, %v1300_v13  ;;  %v1273_v33 = vadd.f32 %v1264_v17, %v1226_v14  ;;  %v1404_v35 = vmul.f32 %v1808_v31, %v2142_v30  ;;  %v1764_v38 = vld [vmem:[%s2032_s15 + $0xa0] sm:$0xff]  ;;  %v1301_v40 = vadd.f32 %v1292_v25, %v1245_v15  ;;  %v1773_v43 = vld [vmem:[%s2032_s15 + $0xe8] sm:$0xff]  ;;  %v1782_v44 = vld [vmem:[%s2032_s15 + $0x130] sm:$0xff] }
  0xba   : > { %v1384_v39 = vadd.f32 %v1375_v6, %v1328_v23  ;;  %v1227_v41 = vmul.f32 %v1218_v36, %v2108_v10  ;;  %v1246_v42 = vmul.f32 %v1755_v37, %v2112_v12  ;;  %v1791_v45 = vld [vmem:[%s2032_s15 + $0x178] sm:$0xff]  ;;  %v1421_v47 = vld [vmem:[%s3052_s19] sm:$0xff]  ;;  %v1265_v49 = vmul.f32 %v1764_v38, %v2118_v16  ;;  %v1809_v52 = vld [vmem:[%s2032_s15 + $0x208] sm:$0xff]  ;;  %p1868_p8 = pneg %p1867_p7 }
  0xbb   : > { %v1412_v46 = vadd.f32 %v1403_v7, %v1356_v32  ;;  %v1329_v48 = vadd.f32 %v1320_v26, %v1273_v33  ;;  %v1293_v50 = vmul.f32 %v1773_v43, %v2122_v18  ;;  %v1800_v51 = vld [vmem:[%s2032_s15 + $0x1c0] sm:$0xff]  ;;  %v1357_v53 = vadd.f32 %v1348_v27, %v1301_v40  ;;  %v1219_v57 = vld [vmem:[%s2032_s15 + $0x18] sm:$0xff]  ;;  %v1765_v59 = vld [vmem:[%s2032_s15 + $0xa8] sm:$0xff] }
  0xbc   : > { %v1321_v54 = vmul.f32 %v1782_v44, %v2128_v22  ;;  %v1349_v55 = vmul.f32 %v1791_v45, %v2132_v24  ;;  %v1377_v56 = vmul.f32 %v1800_v51, %v2138_v28  ;;  %v1756_v58 = vld [vmem:[%s2032_s15 + $0x60] sm:$0xff]  ;;  %v1274_v62 = vadd.f32 %v1265_v49, %v1227_v41  ;;  %v1774_v0 = vld [vmem:[%s2032_s15 + $0xf0] sm:$0xff]  ;;  %v1783_v1 = vld [vmem:[%s2032_s15 + $0x138] sm:$0xff]  ;;  %p1875_p12 = pnand %p1874_p11, %p1868_p8 }
  0xbd   : > { %v1430_v60 = vadd.f32 %v1412_v46, %v1384_v39  ;;  %v1385_v61 = vadd.f32 %v1376_v34, %v1329_v48  ;;  %v1302_v63 = vadd.f32 %v1293_v50, %v1246_v42  ;;  %v1792_v2 = vld [vmem:[%s2032_s15 + $0x180] sm:$0xff]  ;;  %v1413_v3 = vadd.f32 %v1404_v35, %v1357_v53  ;;  %v1801_v7 = vld [vmem:[%s2032_s15 + $0x1c8] sm:$0xff]  ;;  %v1810_v15 = vld [vmem:[%s2032_s15 + $0x210] sm:$0xff] }
  0xbe   : > { %v1405_v4 = vmul.f32 %v1809_v52, %v2142_v30  ;;  %v1228_v5 = vmul.f32 %v1219_v57, %v2108_v10  ;;  %v1247_v6 = vmul.f32 %v1756_v58, %v2112_v12  ;;  %v1422_v9 = vld [vmem:[%s3052_s19 + $0x8] sm:$0xff]  ;;  %v1330_v11 = vadd.f32 %v1321_v54, %v1274_v62  ;;  %v1220_v17 = vld [vmem:[%s2032_s15 + $0x20] sm:$0xff]  ;;  %v1766_v26 = vld [vmem:[%s2032_s15 + $0xb0] sm:$0xff] }
  0xbf   : > { %v1439_v8 = vadd.f32 %v1430_v60, %v1421_v47  ;;  %v1358_v13 = vadd.f32 %v1349_v55, %v1302_v63  ;;  %v1266_v14 = vmul.f32 %v1765_v59, %v2118_v16  ;;  %v1431_v19 = vadd.f32 %v1413_v3, %v1385_v61  ;;  %v1757_v25 = vld [vmem:[%s2032_s15 + $0x68] sm:$0xff]  ;;  %v1775_v33 = vld [vmem:[%s2032_s15 + $0xf8] sm:$0xff]  ;;  %v1784_v34 = vld [vmem:[%s2032_s15 + $0x140] sm:$0xff] }
  0xc0   : > { %v1294_v20 = vmul.f32 %v1774_v0, %v2122_v18  ;;  %v1322_v21 = vmul.f32 %v1783_v1, %v2128_v22  ;;  %v1350_v23 = vmul.f32 %v1792_v2, %v2132_v24  ;;  %v1386_v27 = vadd.f32 %v1377_v56, %v1330_v11  ;;  %v1793_v35 = vld [vmem:[%s2032_s15 + $0x188] sm:$0xff]  ;;  %v1423_v37 = vld [vmem:[%s3052_s19 + $0x10] sm:$0xff]  ;;  %v1811_v46 = vld [vmem:[%s2032_s15 + $0x218] sm:$0xff] }
  0xc1   : > { %1449 = vst.msk [vmem:[%s3052_s19] sm:$0xff] %vm1448_vm10, %v1439_v8  ;;  %v1414_v29 = vadd.f32 %v1405_v4, %v1358_v13  ;;  %v1275_v31 = vadd.f32 %v1266_v14, %v1228_v5  ;;  %v1378_v32 = vmul.f32 %v1801_v7, %v2138_v28  ;;  %v1440_v36 = vadd.f32 %v1431_v19, %v1422_v9  ;;  %v1802_v41 = vld [vmem:[%s2032_s15 + $0x1d0] sm:$0xff]  ;;  %v1221_v47 = vld [vmem:[%s2032_s15 + $0x28] sm:$0xff]  ;;  %v1767_v53 = vld [vmem:[%s2032_s15 + $0xb8] sm:$0xff] }
  0xc2   : > { %v1303_v38 = vadd.f32 %v1294_v20, %v1247_v6  ;;  %v1406_v39 = vmul.f32 %v1810_v15, %v2142_v30  ;;  %v1229_v40 = vmul.f32 %v1220_v17, %v2108_v10  ;;  %v1248_v44 = vmul.f32 %v1757_v25, %v2112_v12  ;;  %v1758_v52 = vld [vmem:[%s2032_s15 + $0x70] sm:$0xff]  ;;  %v1776_v54 = vld [vmem:[%s2032_s15 + $0x100] sm:$0xff]  ;;  %v1785_v59 = vld [vmem:[%s2032_s15 + $0x148] sm:$0xff] }
  0xc3   : > { %v1432_v42 = vadd.f32 %v1414_v29, %v1386_v27  ;;  %v1331_v43 = vadd.f32 %v1322_v21, %v1275_v31  ;;  %v1267_v45 = vmul.f32 %v1766_v26, %v2118_v16  ;;  %1450 = vst.msk [vmem:[%s3052_s19 + $0x8] sm:$0xff] %vm1448_vm10, %v1440_v36  ;;  %v1295_v49 = vmul.f32 %v1775_v33, %v2122_v18  ;;  %v1794_v60 = vld [vmem:[%s2032_s15 + $0x190] sm:$0xff]  ;;  %v1803_v1 = vld [vmem:[%s2032_s15 + $0x1d8] sm:$0xff]  ;;  %v1812_v7 = vld [vmem:[%s2032_s15 + $0x220] sm:$0xff] }
  0xc4   : > { %v1359_v48 = vadd.f32 %v1350_v23, %v1303_v38  ;;  %v1323_v50 = vmul.f32 %v1784_v34, %v2128_v22  ;;  %v1351_v51 = vmul.f32 %v1793_v35, %v2132_v24  ;;  %v1379_v58 = vmul.f32 %v1802_v41, %v2138_v28  ;;  %v1424_v2 = vld [vmem:[%s3052_s19 + $0x18] sm:$0xff]  ;;  %v1222_v8 = vld [vmem:[%s2032_s15 + $0x30] sm:$0xff]  ;;  %v1768_v17 = vld [vmem:[%s2032_s15 + $0xc0] sm:$0xff] }
  0xc5   : > { %v1441_v55 = vadd.f32 %v1432_v42, %v1423_v37  ;;  %v1387_v56 = vadd.f32 %v1378_v32, %v1331_v43  ;;  %v1276_v57 = vadd.f32 %v1267_v45, %v1229_v40  ;;  %v1304_v62 = vadd.f32 %v1295_v49, %v1248_v44  ;;  %v1759_v15 = vld [vmem:[%s2032_s15 + $0x78] sm:$0xff]  ;;  %v1777_v25 = vld [vmem:[%s2032_s15 + $0x108] sm:$0xff]  ;;  %v1786_v26 = vld [vmem:[%s2032_s15 + $0x150] sm:$0xff] }
  0xc6   : > { %v1415_v61 = vadd.f32 %v1406_v39, %v1359_v48  ;;  %v1407_v63 = vmul.f32 %v1811_v46, %v2142_v30  ;;  %v1230_v0 = vmul.f32 %v1221_v47, %v2108_v10  ;;  %v1249_v4 = vmul.f32 %v1758_v52, %v2112_v12  ;;  %v1795_v27 = vld [vmem:[%s2032_s15 + $0x198] sm:$0xff]  ;;  %v1804_v34 = vld [vmem:[%s2032_s15 + $0x1e0] sm:$0xff]  ;;  %v1813_v40 = vld [vmem:[%s2032_s15 + $0x228] sm:$0xff] }
  0xc7   : > { %1451 = vst.msk [vmem:[%s3052_s19 + $0x10] sm:$0xff] %vm1448_vm10, %v1441_v55  ;;  %v1332_v3 = vadd.f32 %v1323_v50, %v1276_v57  ;;  %v1268_v5 = vmul.f32 %v1767_v53, %v2118_v16  ;;  %v1296_v6 = vmul.f32 %v1776_v54, %v2122_v18  ;;  %v1360_v11 = vadd.f32 %v1351_v51, %v1304_v62  ;;  %v1425_v35 = vld [vmem:[%s3052_s19 + $0x20] sm:$0xff]  ;;  %v1223_v41 = vld [vmem:[%s2032_s15 + $0x38] sm:$0xff]  ;;  %v1426_v43 = vld [vmem:[%s3052_s19 + $0x28] sm:$0xff] }
  0xc8   : > { %v1433_v9 = vadd.f32 %v1415_v61, %v1387_v56  ;;  %v1324_v13 = vmul.f32 %v1785_v59, %v2128_v22  ;;  %v1352_v14 = vmul.f32 %v1794_v60, %v2132_v24  ;;  %v1380_v23 = vmul.f32 %v1803_v1, %v2138_v28  ;;  %v1760_v47 = vld [vmem:[%s2032_s15 + $0x80] sm:$0xff]  ;;  %v1769_v48 = vld [vmem:[%s2032_s15 + $0xc8] sm:$0xff]  ;;  %v1778_v49 = vld [vmem:[%s2032_s15 + $0x110] sm:$0xff] }
  0xc9   : > { %v1388_v19 = vadd.f32 %v1379_v58, %v1332_v3  ;;  %v1277_v20 = vadd.f32 %v1268_v5, %v1230_v0  ;;  %v1305_v21 = vadd.f32 %v1296_v6, %v1249_v4  ;;  %v1416_v31 = vadd.f32 %v1407_v63, %v1360_v11  ;;  %v1787_v54 = vld [vmem:[%s2032_s15 + $0x158] sm:$0xff]  ;;  %v1796_v55 = vld [vmem:[%s2032_s15 + $0x1a0] sm:$0xff]  ;;  %v1805_v56 = vld [vmem:[%s2032_s15 + $0x1e8] sm:$0xff] }
  0xca   : > { %v1442_v29 = vadd.f32 %v1433_v9, %v1424_v2  ;;  %v1408_v32 = vmul.f32 %v1812_v7, %v2142_v30  ;;  %v1231_v33 = vmul.f32 %v1222_v8, %v2108_v10  ;;  %v1250_v38 = vmul.f32 %v1759_v15, %v2112_v12 }
  0xcb   : > { %v1333_v36 = vadd.f32 %v1324_v13, %v1277_v20  ;;  %v1361_v37 = vadd.f32 %v1352_v14, %v1305_v21  ;;  %v1269_v39 = vmul.f32 %v1768_v17, %v2118_v16  ;;  %v1434_v42 = vadd.f32 %v1416_v31, %v1388_v19 }
  0xcc   : > { %1452 = vst.msk [vmem:[%s3052_s19 + $0x18] sm:$0xff] %vm1448_vm10, %v1442_v29  ;;  %v1297_v44 = vmul.f32 %v1777_v25, %v2122_v18  ;;  %v1325_v45 = vmul.f32 %v1786_v26, %v2128_v22  ;;  %v1353_v46 = vmul.f32 %v1795_v27, %v2132_v24  ;;  %v1381_v53 = vmul.f32 %v1804_v34, %v2138_v28 }
  0xcd   : > { %v1389_v50 = vadd.f32 %v1380_v23, %v1333_v36  ;;  %v1417_v51 = vadd.f32 %v1408_v32, %v1361_v37  ;;  %v1278_v52 = vadd.f32 %v1269_v39, %v1231_v33  ;;  %v1443_v57 = vadd.f32 %v1434_v42, %v1425_v35 }
  0xce   : > { %v1306_v58 = vadd.f32 %v1297_v44, %v1250_v38  ;;  %v1409_v59 = vmul.f32 %v1813_v40, %v2142_v30  ;;  %v1232_v60 = vmul.f32 %v1223_v41, %v2108_v10 }
  0xcf   : > { %1878 = shalt.err (!%p1875_p12)
}
  0xd0   : > { %s3053_s20 = sld [smem:[#allocation13_spill]] }
  0xd6   : > { %s1879_s2 = scalar_lea.hbm %s3053_s20, 640 }
  0xd7   : > { %p1880_p13 = scmp.ne.s32.totalorder %s3053_s20, %s1879_s2  ;;  %p1885_p2 = scmp.lt.u32.totalorder %s1879_s2, %s3053_s20 }
  0xd9   : > { %p1881_p0 = pnand %p1880_p13, %p1836_p5 }
  0xdb   : > { %p1882_p1 = pneg %p1881_p0 }
  0xdd   : > { %p1887_p3 = pnand %p1885_p2, %p1882_p1 }
  0xdf   : > { %1890 = shalt.err (!%p1887_p3)
}
  0xe0   : > { %s1909_s23 = smov 128   ;;  %s1910_s25 = smov 8   ;;  %v1435_v61 = vadd.f32 %v1417_v51, %v1389_v50  ;;  %v1334_v62 = vadd.f32 %v1325_v45, %v1278_v52  ;;  %v1251_v63 = vmul.f32 %v1760_v47, %v2112_v12  ;;  %v1270_v0 = vmul.f32 %v1769_v48, %v2118_v16  ;;  %v1814_v1 = vld [vmem:[%s2032_s15 + $0x230] sm:$0xff]  ;;  %v1224_v2 = vld [vmem:[%s2032_s15 + $0x40] sm:$0x1]  ;;  %1453 = vst.msk [vmem:[%s3052_s19 + $0x20] sm:$0xff] %vm1448_vm10, %v1443_v57 }
  0xe1   : > { %1827 = dma.vmem_to_hbm [thread:$0]  (%p1836_p5), %s2914_s12, 640, %s3053_s20, [#allocation3], %s1909_s23, %s1909_s23, %s1910_s25   ;;  %v1362_v3 = vadd.f32 %v1353_v46, %v1306_v58  ;;  %v1298_v4 = vmul.f32 %v1778_v49, %v2122_v18  ;;  %v1326_v5 = vmul.f32 %v1787_v54, %v2128_v22  ;;  %v1354_v6 = vmul.f32 %v1796_v55, %v2132_v24 }
  0xe2   : > { %v1761_v7 = vld [vmem:[%s2032_s15 + $0x88] sm:$0x1]  ;;  %v1770_v8 = vld [vmem:[%s2032_s15 + $0xd0] sm:$0x1]  ;;  %v1779_v9 = vld [vmem:[%s2032_s15 + $0x118] sm:$0x1]  ;;  %v1444_v11 = vadd.f32 %v1435_v61, %v1426_v43  ;;  %v1390_v13 = vadd.f32 %v1381_v53, %v1334_v62  ;;  %v1279_v14 = vadd.f32 %v1270_v0, %v1232_v60  ;;  %v1382_v15 = vmul.f32 %v1805_v56, %v2138_v28 }
  0xe3   : > { %v1788_v17 = vld [vmem:[%s2032_s15 + $0x160] sm:$0x1]  ;;  %v1797_v19 = vld [vmem:[%s2032_s15 + $0x1a8] sm:$0x1]  ;;  %v1418_v20 = vadd.f32 %v1409_v59, %v1362_v3  ;;  %v1307_v21 = vadd.f32 %v1298_v4, %v1251_v63  ;;  %v1410_v23 = vmul.f32 %v1814_v1, %v2142_v30  ;;  %v1233_v25 = vmul.f32 %v1224_v2, %v2108_v10  ;;  %v1806_v26 = vld [vmem:[%s2032_s15 + $0x1f0] sm:$0x1] }
  0xe4   : > { %1454 = vst.msk [vmem:[%s3052_s19 + $0x28] sm:$0xff] %vm1448_vm10, %v1444_v11  ;;  %v1427_v27 = vld [vmem:[%s3052_s19 + $0x30] sm:$0xff]  ;;  %v1335_v29 = vadd.f32 %v1326_v5, %v1279_v14  ;;  %v1252_v31 = vmul.f32 %v1761_v7, %v2112_v12  ;;  %v1271_v32 = vmul.f32 %v1770_v8, %v2118_v16  ;;  %v1299_v33 = vmul.f32 %v1779_v9, %v2122_v18  ;;  %v1815_v34 = vld [vmem:[%s2032_s15 + $0x238] sm:$0x1]  ;;  %v1429_v46 = vld [vmem:[%s3052_s19 + $0x40] sm:$0x1] }
  0xe5   : > { %v1436_v35 = vadd.f32 %v1418_v20, %v1390_v13  ;;  %v1363_v10 = vadd.f32 %v1354_v6, %v1307_v21  ;;  %v1327_v36 = vmul.f32 %v1788_v17, %v2128_v22  ;;  %v1355_v37 = vmul.f32 %v1797_v19, %v2132_v24  ;;  %v1428_v16 = vld [vmem:[%s3052_s19 + $0x38] sm:$0xff] }
  0xe6   : > { %v1391_v38 = vadd.f32 %v1382_v15, %v1335_v29  ;;  %v1280_v39 = vadd.f32 %v1271_v32, %v1233_v25  ;;  %v1308_v40 = vadd.f32 %v1299_v33, %v1252_v31  ;;  %v1383_v41 = vmul.f32 %v1806_v26, %v2138_v28 }
  0xe7   : > { %v1445_v42 = vadd.f32 %v1436_v35, %v1427_v27  ;;  %v1419_v43 = vadd.f32 %v1410_v23, %v1363_v10  ;;  %v1411_v12 = vmul.f32 %v1815_v34, %v2142_v30  ;;  %vm1457_vm11 = vcmask 122880  }
  0xe8   : > { %v1336_v18 = vadd.f32 %v1327_v36, %v1280_v39  ;;  %v1364_v44 = vadd.f32 %v1355_v37, %v1308_v40 }
  0xe9   : > { %1455 = vst.msk [vmem:[%s3052_s19 + $0x30] sm:$0xff] %vm1448_vm10, %v1445_v42  ;;  %v1437_v22 = vadd.f32 %v1419_v43, %v1391_v38 }
  0xea   : > { %v1392_v24 = vadd.f32 %v1383_v41, %v1336_v18  ;;  %v1420_v45 = vadd.f32 %v1411_v12, %v1364_v44 }
  0xeb   : > { %v1446_v28 = vadd.f32 %v1437_v22, %v1428_v16 }
  0xec   : > { %v1438_v30 = vadd.f32 %v1420_v45, %v1392_v24 }
  0xed   : > { %1456 = vst.msk [vmem:[%s3052_s19 + $0x38] sm:$0xff] %vm1448_vm10, %v1446_v28 }
  0xee   : > { %v1447_v47 = vadd.f32 %v1438_v30, %v1429_v46 }
  0xf0   : > { %1458 = vst.msk [vmem:[%s3052_s19 + $0x40] sm:$0x1] %vm1457_vm11, %v1447_v47 }
  0xf1   : > { %1900 = dma.done.wait (%p1836_p5), [#allocation3], 640  }
  0xf2   : > { %1902 = vsyncadd (%p1836_p5), [#allocation3], 4294966656 }
  0xf3 PF: > { %s3054_s23 = sld [smem:[#allocation8_spill]] }
  0xf9   : > { %s25_s21 = sadd.s32 1, %s3054_s23  }
  0xfa   : > { %p22_p4 = scmp.ge.s32.totalorder %s25_s21, 6  }
  0xfc   :  { %24 = sbr.rel (!%p22_p4) target bundleno = 9 (0x9), region = 165 }
 0x103   :  { %1499 = vsyncpa [#allocation3], 1 }
 0x104   :  { %1501 = vsyncpa [#allocation3 + $0x1], 1 }
 0x105   :  { %1502 = vsyncpa [#allocation4], 1 }
 0x106   :  { %1504 = vsyncpa [#allocation4 + $0x1], 1 }

</bundles_post_ra>
